<compile_context>
chip_gen: v5e
topology: v5e:2x2
jax: 0.10.0
libtpu: 0.0.40
codegen_flags: <defaults>
</compile_context>

<pallas_src>
import functools
import math

import jax
import jax.numpy as jnp
from jax.experimental import pallas as pl
from jax.experimental.pallas import tpu as pltpu


# ----------------------------- shared math helpers ----------------------------

def _layer_norm(x, g, b, eps=1e-5):
    # matches torch.nn.LayerNorm(dim): biased variance, eps=1e-5
    mu = jnp.mean(x, axis=-1, keepdims=True)
    var = jnp.mean((x - mu) ** 2, axis=-1, keepdims=True)
    return (x - mu) * jax.lax.rsqrt(var + eps) * g + b


def _gelu_exact(x):
    # matches torch.nn.GELU() default (erf-based, not tanh approximation)
    return 0.5 * x * (1.0 + jax.lax.erf(x * (1.0 / math.sqrt(2.0))))


# ---------------------------------- kernel ------------------------------------

def _fused_layers_kernel(x_ref,
                         ag_ref, ab_ref, wqkv_ref, wout_ref, bout_ref,
                         fg_ref, fb_ref, w1_ref, b1_ref, w2_ref, b2_ref,
                         o_ref, acc_ref, *, heads, pad_head, matmul_dtype):
    """One (batch, layer) grid step:
         x = Attention(LayerNorm(x)) + x ; x = FeedForward(LayerNorm(x)) + x
       The running activation stays resident in `acc_ref` (VMEM) across the
       depth grid axis; HBM is touched only on the first / last layer."""
    d = pl.program_id(1)
    n_layers = pl.num_programs(1)

    # Load the activation from HBM only for the first layer of this batch row.
    @pl.when(d == 0)
    def _():
        acc_ref[...] = x_ref[0]

    x = acc_ref[...]                                   # (N, D) f32
    N, D = x.shape
    P = pad_head
    pinner = heads * P

    # ---- attention residual block -------------------------------------------
    xn = _layer_norm(x, ag_ref[...], ab_ref[...])      # f32
    qkv = jnp.dot(xn.astype(matmul_dtype), wqkv_ref[...],
                  preferred_element_type=jnp.float32)  # (N, 3*heads*P) f32
    # (attention scale dim_head**-0.5 was folded into the Q weights at init)

    attn_out = bout_ref[...] * jnp.ones((N, 1), jnp.float32)   # (N, D) f32
    for h in range(heads):                             # static unroll; all
        lo = h * P                                     # slices 128-lane aligned
        q_h = qkv[:, 0 * pinner + lo:0 * pinner + lo + P].astype(matmul_dtype)
        k_h = qkv[:, 1 * pinner + lo:1 * pinner + lo + P].astype(matmul_dtype)
        v_h = qkv[:, 2 * pinner + lo:2 * pinner + lo + P].astype(matmul_dtype)

        dots = jnp.einsum('np,mp->nm', q_h, k_h,
                          preferred_element_type=jnp.float32)   # (N, N) f32
        dots = dots - jnp.max(dots, axis=-1, keepdims=True)
        p = jnp.exp(dots)
        p = p / jnp.sum(p, axis=-1, keepdims=True)     # exact softmax (f32)

        ctx = jnp.dot(p.astype(matmul_dtype), v_h,
                      preferred_element_type=jnp.float32)       # (N, P) f32
        w_h = wout_ref[pl.ds(lo, P), :]                # (P, D), lane/sublane aligned
        attn_out = attn_out + jnp.dot(ctx.astype(matmul_dtype), w_h,
                                      preferred_element_type=jnp.float32)

    x = x + attn_out                                   # residual (f32)

    # ---- feed-forward residual block -----------------------------------------
    xn2 = _layer_norm(x, fg_ref[...], fb_ref[...])
    h1 = jnp.dot(xn2.astype(matmul_dtype), w1_ref[...],
                 preferred_element_type=jnp.float32) + b1_ref[...]
    # TODO(synk): optionally switch to tanh-approx GELU to move this onto the EUP
    # if strict parity with torch's exact erf GELU is not required.
    h1 = _gelu_exact(h1)
    ff_out = jnp.dot(h1.astype(matmul_dtype), w2_ref[...],
                     preferred_element_type=jnp.float32) + b2_ref[...]
    x = x + ff_out

    acc_ref[...] = x                                   # stays resident in VMEM

    # Write the output block to HBM only after the last layer.
    @pl.when(d == n_layers - 1)
    def _():
        o_ref[0] = x.astype(o_ref.dtype)


# ------------------------------ pallas wrappers -------------------------------

def _stacked_weight_spec(p):
    """Weight stacked as (depth, ...): select layer d, squeeze the depth axis."""
    rest = tuple(p.shape[1:])
    nrest = len(rest)
    return pl.BlockSpec((None,) + rest, lambda b, d, _n=nrest: (d,) + (0,) * _n)


def _vmem_limit_bytes(N, D, pinner, mlp_dim, stacked_params):
    depth = stacked_params[0].shape[0]
    wbytes = sum((int(p.size) // depth) * p.dtype.itemsize for p in stacked_params)
    act = N * D * 4
    # in-kernel f32 temporaries: qkv (N,3*pinner), per-head scores/ctx,
    # ff hidden (N,mlp_dim), plus a handful of (N,D) copies (x, xn, attn, ff)
    temps = 4 * N * (3 * pinner + 2 * pinner + mlp_dim + 6 * D)
    limit = 2 * wbytes + 6 * act + 2 * temps + (4 << 20)
    return int(min(40 << 20, limit))                   # 40 MiB cap: safe on v7x


def transformer_forward(x, params, *, heads):
    """params is the tuple of depth-stacked (padded) weights from init."""
    B, N, D = x.shape
    (ag, ab, wqkv, wout, bout, fg, fb, w1, b1, w2, b2) = params
    depth = ag.shape[0]
    pad_head = wqkv.shape[-1] // (3 * heads)
    mlp_dim = w1.shape[-1]
    matmul_dtype = wqkv.dtype

    kernel = functools.partial(_fused_layers_kernel, heads=heads,
                               pad_head=pad_head, matmul_dtype=matmul_dtype)
    weights = [ag, ab, wqkv, wout, bout, fg, fb, w1, b1, w2, b2]

    return pl.pallas_call(
        kernel,
        out_shape=jax.ShapeDtypeStruct((B, N, D), x.dtype),
        grid=(B, depth),
        in_specs=[pl.BlockSpec((1, N, D), lambda b, d: (b, 0, 0))]
                 + [_stacked_weight_spec(p) for p in weights],
        out_specs=pl.BlockSpec((1, N, D), lambda b, d: (b, 0, 0)),
        scratch_shapes=[pltpu.VMEM((N, D), jnp.float32)],   # resident activation
        compiler_params=pltpu.CompilerParams(
            dimension_semantics=("parallel", "arbitrary"),   # batch across TCs,
            vmem_limit_bytes=_vmem_limit_bytes(              # depth is sequential
                N, D, heads * pad_head, mlp_dim, weights)),
    )(x, *weights)


# ------------------------------ parameter init --------------------------------

def init_transformer_params(key, dim, depth, heads, dim_head, mlp_dim,
                            matmul_dtype=jnp.bfloat16):
    """Returns (kernel_params, ref_layers).

    kernel_params: depth-stacked, head-padded bf16 weights for the fused kernel
                   (each head padded with zeros to a 128-lane slot -> exact math).
    ref_layers:    per-layer unpadded weights (same draws) for the pure-JAX
                   torch-equivalent reference."""
    inner = heads * dim_head
    pad_head = ((dim_head + 127) // 128) * 128
    scale = dim_head ** -0.5

    def uni(k, shape, fan_in):
        bound = 1.0 / math.sqrt(fan_in)
        return jax.random.uniform(k, shape, jnp.float32, -bound, bound)

    names = ("ag", "ab", "wqkv", "wout", "bout", "fg", "fb", "w1", "b1", "w2", "b2")
    stacked = {n: [] for n in names}
    ref_layers = []

    for _ in range(depth):
        key, kq, kk, kv, ko, kob, k1, k1b, k2, k2b = jax.random.split(key, 10)
        # torch nn.Linear init: U(-1/sqrt(fan_in), 1/sqrt(fan_in))
        wq = uni(kq, (dim, heads, dim_head), dim) * scale   # fold attention scale
        wk = uni(kk, (dim, heads, dim_head), dim)
        wv = uni(kv, (dim, heads, dim_head), dim)
        wout = uni(ko, (inner, dim), inner)
        bout = uni(kob, (1, dim), inner)
        w1 = uni(k1, (dim, mlp_dim), dim)
        b1 = uni(k1b, (1, mlp_dim), dim)
        w2 = uni(k2, (mlp_dim, dim), mlp_dim)
        b2 = uni(k2b, (1, dim), mlp_dim)
        ag = jnp.ones((1, dim), jnp.float32)
        ab = jnp.zeros((1, dim), jnp.float32)
        fg = jnp.ones((1, dim), jnp.float32)
        fb = jnp.zeros((1, dim), jnp.float32)

        def pad_cols(w):       # (dim, heads, dim_head) -> (dim, heads*pad_head)
            wp = jnp.zeros((dim, heads, pad_head), jnp.float32)
            wp = wp.at[:, :, :dim_head].set(w)
            return wp.reshape(dim, heads * pad_head)

        wqkv_pad = jnp.concatenate(
            [pad_cols(wq), pad_cols(wk), pad_cols(wv)], axis=-1).astype(matmul_dtype)
        wout_pad = (jnp.zeros((heads, pad_head, dim), jnp.float32)
                    .at[:, :dim_head, :].set(wout.reshape(heads, dim_head, dim))
                    .reshape(heads * pad_head, dim).astype(matmul_dtype))

        stacked["ag"].append(ag); stacked["ab"].append(ab)
        stacked["wqkv"].append(wqkv_pad)
        stacked["wout"].append(wout_pad)
        stacked["bout"].append(bout)
        stacked["fg"].append(fg); stacked["fb"].append(fb)
        stacked["w1"].append(w1.astype(matmul_dtype)); stacked["b1"].append(b1)
        stacked["w2"].append(w2.astype(matmul_dtype)); stacked["b2"].append(b2)

        ref_layers.append(dict(
            ag=ag, ab=ab,
            wqkv=jnp.concatenate([wq.reshape(dim, inner), wk.reshape(dim, inner),
                                  wv.reshape(dim, inner)], axis=-1).astype(matmul_dtype),
            wout=wout.astype(matmul_dtype), bout=bout,
            fg=fg, fb=fb,
            w1=w1.astype(matmul_dtype), b1=b1,
            w2=w2.astype(matmul_dtype), b2=b2))

    kernel_params = tuple(jnp.stack(stacked[n]) for n in names)
    return kernel_params, ref_layers


# --------------------------- pure-JAX reference --------------------------------

def reference_forward(x, ref_layers, *, heads, dim_head):
    """Mirrors the PyTorch module (unpadded weights, torch-style rearranges);
    uses the same bf16 matmul operands / f32 accumulation as the kernel so the
    comparison is apples-to-apples.  Verifies the kernel's head padding too."""
    B, N, _ = x.shape
    inner = heads * dim_head
    for lyr in ref_layers:
        mm = lyr["wqkv"].dtype
        xn = _layer_norm(x, lyr["ag"], lyr["ab"])
        qkv = jnp.einsum('bnd,df->bnf', xn.astype(mm), lyr["wqkv"],
                         preferred_element_type=jnp.float32)
        q, k, v = jnp.split(qkv, 3, axis=-1)
        to_h = lambda t: t.reshape(B, N, heads, dim_head).astype(mm)
        q, k, v = to_h(q), to_h(k), to_h(v)
        dots = jnp.einsum('bnhd,bmhd->bhnm', q, k,
                          preferred_element_type=jnp.float32)   # scale folded in wq
        attn = jax.nn.softmax(dots, axis=-1)
        ctx = jnp.einsum('bhnm,bmhd->bnhd', attn.astype(mm), v,
                         preferred_element_type=jnp.float32).reshape(B, N, inner)
        x = jnp.einsum('bni,id->bnd', ctx.astype(mm), lyr["wout"],
                       preferred_element_type=jnp.float32) + lyr["bout"] + x

        xn = _layer_norm(x, lyr["fg"], lyr["fb"])
        h = _gelu_exact(jnp.einsum('bnd,dm->bnm', xn.astype(mm), lyr["w1"],
                                   preferred_element_type=jnp.float32) + lyr["b1"])
        x = jnp.einsum('bnm,md->bnd', h.astype(mm), lyr["w2"],
                       preferred_element_type=jnp.float32) + lyr["b2"] + x
    return x


# ----------------------------------- main --------------------------------------

if __name__ == "__main__":
    # small, lane-dense shapes consistent with Transformer(dim, depth, heads, dim_head, mlp_dim)
    B, N = 2, 16
    dim, depth, heads, dim_head, mlp_dim = 128, 2, 4, 32, 256

    key = jax.random.PRNGKey(0)
    kx, kp = jax.random.split(key)
    x = jax.random.normal(kx, (B, N, dim), jnp.float32)
    kernel_params, ref_layers = init_transformer_params(
        kp, dim, depth, heads, dim_head, mlp_dim)

    out = transformer_forward(x, kernel_params, heads=heads)
    out = jax.block_until_ready(out)

    ref = reference_forward(x, ref_layers, heads=heads, dim_head=dim_head)
    assert out.shape == (B, N, dim)
    assert bool(jnp.all(jnp.isfinite(out)))
    # Same bf16 operand choices in kernel and reference; softmax uses an exact
    # divide, so only MXU accumulation-order differences remain.
    assert jnp.allclose(out, ref, atol=1e-2, rtol=1e-2), "mismatch vs reference"

    print("KERNEL_OK")
</pallas_src>

<mosaic_0001>
module attributes {stable_mosaic.version = 11 : i64} {
  func.func @_fused_layers_kernel(%arg0: i32, %arg1: i32, %arg2: memref<1x16x128xf32, #tpu.memory_space<vmem>>, %arg3: memref<1x1x128xf32, #tpu.memory_space<vmem>>, %arg4: memref<1x1x128xf32, #tpu.memory_space<vmem>>, %arg5: memref<1x128x1536xbf16, #tpu.memory_space<vmem>>, %arg6: memref<1x512x128xbf16, #tpu.memory_space<vmem>>, %arg7: memref<1x1x128xf32, #tpu.memory_space<vmem>>, %arg8: memref<1x1x128xf32, #tpu.memory_space<vmem>>, %arg9: memref<1x1x128xf32, #tpu.memory_space<vmem>>, %arg10: memref<1x128x256xbf16, #tpu.memory_space<vmem>>, %arg11: memref<1x1x256xf32, #tpu.memory_space<vmem>>, %arg12: memref<1x256x128xbf16, #tpu.memory_space<vmem>>, %arg13: memref<1x1x128xf32, #tpu.memory_space<vmem>>, %arg14: memref<1x16x128xf32, #tpu.memory_space<vmem>>, %arg15: memref<16x128xf32, #tpu.memory_space<vmem>>) attributes {dimension_semantics = [#tpu.dimension_semantics<parallel>, #tpu.dimension_semantics<arbitrary>], iteration_bounds = array<i64: 2, 2>, scalar_prefetch = 0 : i64, scratch_operands = 1 : i64, tpu.core_type = #tpu.core_type<tc>, window_params = [{transform_indices = @transform_0, window_bounds = array<i64: 1, 16, 128>}, {transform_indices = @transform_1, window_bounds = array<i64: 1, 1, 128>}, {transform_indices = @transform_2, window_bounds = array<i64: 1, 1, 128>}, {transform_indices = @transform_3, window_bounds = array<i64: 1, 128, 1536>}, {transform_indices = @transform_4, window_bounds = array<i64: 1, 512, 128>}, {transform_indices = @transform_5, window_bounds = array<i64: 1, 1, 128>}, {transform_indices = @transform_6, window_bounds = array<i64: 1, 1, 128>}, {transform_indices = @transform_7, window_bounds = array<i64: 1, 1, 128>}, {transform_indices = @transform_8, window_bounds = array<i64: 1, 128, 256>}, {transform_indices = @transform_9, window_bounds = array<i64: 1, 1, 256>}, {transform_indices = @transform_10, window_bounds = array<i64: 1, 256, 128>}, {transform_indices = @transform_11, window_bounds = array<i64: 1, 1, 128>}, {transform_indices = @transform_12, window_bounds = array<i64: 1, 16, 128>}]} {
    %c0_i32 = arith.constant 0 : i32
    %0 = arith.cmpi eq, %arg1, %c0_i32 : i32
    %1 = arith.extui %0 : i1 to i32
    %c0_i32_0 = arith.constant 0 : i32
    %2 = arith.cmpi ne, %1, %c0_i32_0 : i32
    scf.if %2 {
      %c0_80 = arith.constant 0 : index
      %c0_81 = arith.constant 0 : index
      %c0_82 = arith.constant 0 : index
      %188 = vector.load %arg2[%c0_80, %c0_81, %c0_82] : memref<1x16x128xf32, #tpu.memory_space<vmem>>, vector<1x16x128xf32>
      %189 = vector.shape_cast %188 : vector<1x16x128xf32> to vector<16x128xf32>
      %c0_83 = arith.constant 0 : index
      %c0_84 = arith.constant 0 : index
      %190 = vector.load %arg15[%c0_83, %c0_84] : memref<16x128xf32, #tpu.memory_space<vmem>>, vector<16x128xf32>
      tpu.vector_store %arg15[%c0_83, %c0_84], %189 {strides = array<i32>} : memref<16x128xf32, #tpu.memory_space<vmem>>, vector<16x128xf32>,
    } else {
    }
    %c0 = arith.constant 0 : index
    %c0_1 = arith.constant 0 : index
    %3 = vector.load %arg15[%c0, %c0_1] : memref<16x128xf32, #tpu.memory_space<vmem>>, vector<16x128xf32>
    %c0_2 = arith.constant 0 : index
    %c0_3 = arith.constant 0 : index
    %c0_4 = arith.constant 0 : index
    %4 = vector.load %arg3[%c0_2, %c0_3, %c0_4] : memref<1x1x128xf32, #tpu.memory_space<vmem>>, vector<1x1x128xf32>
    %5 = vector.shape_cast %4 : vector<1x1x128xf32> to vector<1x128xf32>
    %c0_5 = arith.constant 0 : index
    %c0_6 = arith.constant 0 : index
    %c0_7 = arith.constant 0 : index
    %6 = vector.load %arg4[%c0_5, %c0_6, %c0_7] : memref<1x1x128xf32, #tpu.memory_space<vmem>>, vector<1x1x128xf32>
    %7 = vector.shape_cast %6 : vector<1x1x128xf32> to vector<1x128xf32>
    %cst = arith.constant dense<0.000000e+00> : vector<16xf32>
    %8 = vector.multi_reduction <add>, %3, %cst [1] : vector<16x128xf32> to vector<16xf32>
    %9 = vector.shape_cast %8 : vector<16xf32> to vector<16x1xf32>
    %cst_8 = arith.constant 1.280000e+02 : f32
    %10 = vector.broadcast %cst_8 : f32 to vector<16x1xf32>
    %11 = arith.divf %9, %10 : vector<16x1xf32>
    %12 = vector.broadcast %11 : vector<16x1xf32> to vector<16x128xf32>
    %13 = arith.subf %3, %12 : vector<16x128xf32>
    %14 = arith.mulf %13, %13 : vector<16x128xf32>
    %cst_9 = arith.constant dense<0.000000e+00> : vector<16xf32>
    %15 = vector.multi_reduction <add>, %14, %cst_9 [1] : vector<16x128xf32> to vector<16xf32>
    %16 = vector.shape_cast %15 : vector<16xf32> to vector<16x1xf32>
    %cst_10 = arith.constant 1.280000e+02 : f32
    %17 = vector.broadcast %cst_10 : f32 to vector<16x1xf32>
    %18 = arith.divf %16, %17 : vector<16x1xf32>
    %19 = vector.broadcast %11 : vector<16x1xf32> to vector<16x128xf32>
    %20 = arith.subf %3, %19 : vector<16x128xf32>
    %cst_11 = arith.constant 9.99999974E-6 : f32
    %21 = vector.broadcast %cst_11 : f32 to vector<16x1xf32>
    %22 = arith.addf %18, %21 : vector<16x1xf32>
    %23 = math.rsqrt %22 : vector<16x1xf32>
    %24 = vector.broadcast %23 : vector<16x1xf32> to vector<16x128xf32>
    %25 = arith.mulf %20, %24 : vector<16x128xf32>
    %26 = vector.broadcast %5 : vector<1x128xf32> to vector<16x128xf32>
    %27 = arith.mulf %25, %26 : vector<16x128xf32>
    %28 = vector.broadcast %7 : vector<1x128xf32> to vector<16x128xf32>
    %29 = arith.addf %27, %28 : vector<16x128xf32>
    %30 = arith.truncf %29 : vector<16x128xf32> to vector<16x128xbf16>
    %c0_12 = arith.constant 0 : index
    %c0_13 = arith.constant 0 : index
    %c0_14 = arith.constant 0 : index
    %31 = vector.load %arg5[%c0_12, %c0_13, %c0_14] : memref<1x128x1536xbf16, #tpu.memory_space<vmem>>, vector<1x128x1536xbf16>
    %32 = vector.shape_cast %31 : vector<1x128x1536xbf16> to vector<128x1536xbf16>
    %cst_15 = arith.constant dense<0.000000e+00> : vector<16x1536xf32>
    %33 = tpu.matmul %30, %32, %cst_15 {dimension_numbers = #tpu.dot_dimension_numbers<[1], [0], [0], [1], [0, 0, 1, 1], [], []>} : vector<16x128xbf16>, vector<128x1536xbf16>, vector<16x1536xf32> -> vector<16x1536xf32>
    %c0_16 = arith.constant 0 : index
    %c0_17 = arith.constant 0 : index
    %c0_18 = arith.constant 0 : index
    %34 = vector.load %arg7[%c0_16, %c0_17, %c0_18] : memref<1x1x128xf32, #tpu.memory_space<vmem>>, vector<1x1x128xf32>
    %35 = vector.shape_cast %34 : vector<1x1x128xf32> to vector<1x128xf32>
    %cst_19 = arith.constant 1.000000e+00 : f32
    %36 = vector.broadcast %cst_19 : f32 to vector<16x1xf32>
    %37 = vector.broadcast %35 : vector<1x128xf32> to vector<16x128xf32>
    %38 = vector.broadcast %36 : vector<16x1xf32> to vector<16x128xf32>
    %39 = arith.mulf %37, %38 : vector<16x128xf32>
    %40 = vector.extract_strided_slice %33 {offsets = [0, 0], sizes = [16, 128], strides = [1, 1]} : vector<16x1536xf32> to vector<16x128xf32>
    %41 = arith.truncf %40 : vector<16x128xf32> to vector<16x128xbf16>
    %42 = vector.extract_strided_slice %33 {offsets = [0, 512], sizes = [16, 128], strides = [1, 1]} : vector<16x1536xf32> to vector<16x128xf32>
    %43 = arith.truncf %42 : vector<16x128xf32> to vector<16x128xbf16>
    %44 = vector.extract_strided_slice %33 {offsets = [0, 1024], sizes = [16, 128], strides = [1, 1]} : vector<16x1536xf32> to vector<16x128xf32>
    %45 = arith.truncf %44 : vector<16x128xf32> to vector<16x128xbf16>
    "tpu.trace_start"() <{level = 10 : i32, message = "np,mp->nm"}> : () -> ()
    %cst_20 = arith.constant dense<0.000000e+00> : vector<16x16xf32>
    %46 = tpu.matmul %41, %43, %cst_20 {dimension_numbers = #tpu.dot_dimension_numbers<[1], [1], [0], [0], [0, 0, 1, 0], [], []>} : vector<16x128xbf16>, vector<16x128xbf16>, vector<16x16xf32> -> vector<16x16xf32>
    "tpu.trace_stop"() : () -> ()
    %cst_21 = arith.constant dense<0xFF800000> : vector<16xf32>
    %47 = vector.multi_reduction <maximumf>, %46, %cst_21 [1] : vector<16x16xf32> to vector<16xf32>
    %48 = vector.shape_cast %47 : vector<16xf32> to vector<16x1xf32>
    %49 = vector.broadcast %48 : vector<16x1xf32> to vector<16x16xf32>
    %50 = arith.subf %46, %49 : vector<16x16xf32>
    %51 = math.exp %50 : vector<16x16xf32>
    %cst_22 = arith.constant dense<0.000000e+00> : vector<16xf32>
    %52 = vector.multi_reduction <add>, %51, %cst_22 [1] : vector<16x16xf32> to vector<16xf32>
    %53 = vector.shape_cast %52 : vector<16xf32> to vector<16x1xf32>
    %54 = vector.broadcast %53 : vector<16x1xf32> to vector<16x16xf32>
    %55 = arith.divf %51, %54 : vector<16x16xf32>
    %56 = arith.truncf %55 : vector<16x16xf32> to vector<16x16xbf16>
    %cst_23 = arith.constant dense<0.000000e+00> : vector<16x128xf32>
    %57 = tpu.matmul %56, %45, %cst_23 {dimension_numbers = #tpu.dot_dimension_numbers<[1], [0], [0], [1], [0, 0, 1, 1], [], []>} : vector<16x16xbf16>, vector<16x128xbf16>, vector<16x128xf32> -> vector<16x128xf32>
    %c0_24 = arith.constant 0 : index
    %c0_25 = arith.constant 0 : index
    %c0_26 = arith.constant 0 : index
    %58 = vector.load %arg6[%c0_24, %c0_25, %c0_26] : memref<1x512x128xbf16, #tpu.memory_space<vmem>>, vector<1x128x128xbf16>
    %59 = vector.shape_cast %58 : vector<1x128x128xbf16> to vector<128x128xbf16>
    %60 = arith.truncf %57 : vector<16x128xf32> to vector<16x128xbf16>
    %cst_27 = arith.constant dense<0.000000e+00> : vector<16x128xf32>
    %61 = tpu.matmul %60, %59, %cst_27 {dimension_numbers = #tpu.dot_dimension_numbers<[1], [0], [0], [1], [0, 0, 1, 1], [], []>} : vector<16x128xbf16>, vector<128x128xbf16>, vector<16x128xf32> -> vector<16x128xf32>
    %62 = arith.addf %39, %61 : vector<16x128xf32>
    %63 = vector.extract_strided_slice %33 {offsets = [0, 128], sizes = [16, 128], strides = [1, 1]} : vector<16x1536xf32> to vector<16x128xf32>
    %64 = arith.truncf %63 : vector<16x128xf32> to vector<16x128xbf16>
    %65 = vector.extract_strided_slice %33 {offsets = [0, 640], sizes = [16, 128], strides = [1, 1]} : vector<16x1536xf32> to vector<16x128xf32>
    %66 = arith.truncf %65 : vector<16x128xf32> to vector<16x128xbf16>
    %67 = vector.extract_strided_slice %33 {offsets = [0, 1152], sizes = [16, 128], strides = [1, 1]} : vector<16x1536xf32> to vector<16x128xf32>
    %68 = arith.truncf %67 : vector<16x128xf32> to vector<16x128xbf16>
    "tpu.trace_start"() <{level = 10 : i32, message = "np,mp->nm"}> : () -> ()
    %cst_28 = arith.constant dense<0.000000e+00> : vector<16x16xf32>
    %69 = tpu.matmul %64, %66, %cst_28 {dimension_numbers = #tpu.dot_dimension_numbers<[1], [1], [0], [0], [0, 0, 1, 0], [], []>} : vector<16x128xbf16>, vector<16x128xbf16>, vector<16x16xf32> -> vector<16x16xf32>
    "tpu.trace_stop"() : () -> ()
    %cst_29 = arith.constant dense<0xFF800000> : vector<16xf32>
    %70 = vector.multi_reduction <maximumf>, %69, %cst_29 [1] : vector<16x16xf32> to vector<16xf32>
    %71 = vector.shape_cast %70 : vector<16xf32> to vector<16x1xf32>
    %72 = vector.broadcast %71 : vector<16x1xf32> to vector<16x16xf32>
    %73 = arith.subf %69, %72 : vector<16x16xf32>
    %74 = math.exp %73 : vector<16x16xf32>
    %cst_30 = arith.constant dense<0.000000e+00> : vector<16xf32>
    %75 = vector.multi_reduction <add>, %74, %cst_30 [1] : vector<16x16xf32> to vector<16xf32>
    %76 = vector.shape_cast %75 : vector<16xf32> to vector<16x1xf32>
    %77 = vector.broadcast %76 : vector<16x1xf32> to vector<16x16xf32>
    %78 = arith.divf %74, %77 : vector<16x16xf32>
    %79 = arith.truncf %78 : vector<16x16xf32> to vector<16x16xbf16>
    %cst_31 = arith.constant dense<0.000000e+00> : vector<16x128xf32>
    %80 = tpu.matmul %79, %68, %cst_31 {dimension_numbers = #tpu.dot_dimension_numbers<[1], [0], [0], [1], [0, 0, 1, 1], [], []>} : vector<16x16xbf16>, vector<16x128xbf16>, vector<16x128xf32> -> vector<16x128xf32>
    %c0_32 = arith.constant 0 : index
    %c128 = arith.constant 128 : index
    %c0_33 = arith.constant 0 : index
    %81 = vector.load %arg6[%c0_32, %c128, %c0_33] : memref<1x512x128xbf16, #tpu.memory_space<vmem>>, vector<1x128x128xbf16>
    %82 = vector.shape_cast %81 : vector<1x128x128xbf16> to vector<128x128xbf16>
    %83 = arith.truncf %80 : vector<16x128xf32> to vector<16x128xbf16>
    %cst_34 = arith.constant dense<0.000000e+00> : vector<16x128xf32>
    %84 = tpu.matmul %83, %82, %cst_34 {dimension_numbers = #tpu.dot_dimension_numbers<[1], [0], [0], [1], [0, 0, 1, 1], [], []>} : vector<16x128xbf16>, vector<128x128xbf16>, vector<16x128xf32> -> vector<16x128xf32>
    %85 = arith.addf %62, %84 : vector<16x128xf32>
    %86 = vector.extract_strided_slice %33 {offsets = [0, 256], sizes = [16, 128], strides = [1, 1]} : vector<16x1536xf32> to vector<16x128xf32>
    %87 = arith.truncf %86 : vector<16x128xf32> to vector<16x128xbf16>
    %88 = vector.extract_strided_slice %33 {offsets = [0, 768], sizes = [16, 128], strides = [1, 1]} : vector<16x1536xf32> to vector<16x128xf32>
    %89 = arith.truncf %88 : vector<16x128xf32> to vector<16x128xbf16>
    %90 = vector.extract_strided_slice %33 {offsets = [0, 1280], sizes = [16, 128], strides = [1, 1]} : vector<16x1536xf32> to vector<16x128xf32>
    %91 = arith.truncf %90 : vector<16x128xf32> to vector<16x128xbf16>
    "tpu.trace_start"() <{level = 10 : i32, message = "np,mp->nm"}> : () -> ()
    %cst_35 = arith.constant dense<0.000000e+00> : vector<16x16xf32>
    %92 = tpu.matmul %87, %89, %cst_35 {dimension_numbers = #tpu.dot_dimension_numbers<[1], [1], [0], [0], [0, 0, 1, 0], [], []>} : vector<16x128xbf16>, vector<16x128xbf16>, vector<16x16xf32> -> vector<16x16xf32>
    "tpu.trace_stop"() : () -> ()
    %cst_36 = arith.constant dense<0xFF800000> : vector<16xf32>
    %93 = vector.multi_reduction <maximumf>, %92, %cst_36 [1] : vector<16x16xf32> to vector<16xf32>
    %94 = vector.shape_cast %93 : vector<16xf32> to vector<16x1xf32>
    %95 = vector.broadcast %94 : vector<16x1xf32> to vector<16x16xf32>
    %96 = arith.subf %92, %95 : vector<16x16xf32>
    %97 = math.exp %96 : vector<16x16xf32>
    %cst_37 = arith.constant dense<0.000000e+00> : vector<16xf32>
    %98 = vector.multi_reduction <add>, %97, %cst_37 [1] : vector<16x16xf32> to vector<16xf32>
    %99 = vector.shape_cast %98 : vector<16xf32> to vector<16x1xf32>
    %100 = vector.broadcast %99 : vector<16x1xf32> to vector<16x16xf32>
    %101 = arith.divf %97, %100 : vector<16x16xf32>
    %102 = arith.truncf %101 : vector<16x16xf32> to vector<16x16xbf16>
    %cst_38 = arith.constant dense<0.000000e+00> : vector<16x128xf32>
    %103 = tpu.matmul %102, %91, %cst_38 {dimension_numbers = #tpu.dot_dimension_numbers<[1], [0], [0], [1], [0, 0, 1, 1], [], []>} : vector<16x16xbf16>, vector<16x128xbf16>, vector<16x128xf32> -> vector<16x128xf32>
    %c0_39 = arith.constant 0 : index
    %c256 = arith.constant 256 : index
    %c0_40 = arith.constant 0 : index
    %104 = vector.load %arg6[%c0_39, %c256, %c0_40] : memref<1x512x128xbf16, #tpu.memory_space<vmem>>, vector<1x128x128xbf16>
    %105 = vector.shape_cast %104 : vector<1x128x128xbf16> to vector<128x128xbf16>
    %106 = arith.truncf %103 : vector<16x128xf32> to vector<16x128xbf16>
    %cst_41 = arith.constant dense<0.000000e+00> : vector<16x128xf32>
    %107 = tpu.matmul %106, %105, %cst_41 {dimension_numbers = #tpu.dot_dimension_numbers<[1], [0], [0], [1], [0, 0, 1, 1], [], []>} : vector<16x128xbf16>, vector<128x128xbf16>, vector<16x128xf32> -> vector<16x128xf32>
    %108 = arith.addf %85, %107 : vector<16x128xf32>
    %109 = vector.extract_strided_slice %33 {offsets = [0, 384], sizes = [16, 128], strides = [1, 1]} : vector<16x1536xf32> to vector<16x128xf32>
    %110 = arith.truncf %109 : vector<16x128xf32> to vector<16x128xbf16>
    %111 = vector.extract_strided_slice %33 {offsets = [0, 896], sizes = [16, 128], strides = [1, 1]} : vector<16x1536xf32> to vector<16x128xf32>
    %112 = arith.truncf %111 : vector<16x128xf32> to vector<16x128xbf16>
    %113 = vector.extract_strided_slice %33 {offsets = [0, 1408], sizes = [16, 128], strides = [1, 1]} : vector<16x1536xf32> to vector<16x128xf32>
    %114 = arith.truncf %113 : vector<16x128xf32> to vector<16x128xbf16>
    "tpu.trace_start"() <{level = 10 : i32, message = "np,mp->nm"}> : () -> ()
    %cst_42 = arith.constant dense<0.000000e+00> : vector<16x16xf32>
    %115 = tpu.matmul %110, %112, %cst_42 {dimension_numbers = #tpu.dot_dimension_numbers<[1], [1], [0], [0], [0, 0, 1, 0], [], []>} : vector<16x128xbf16>, vector<16x128xbf16>, vector<16x16xf32> -> vector<16x16xf32>
    "tpu.trace_stop"() : () -> ()
    %cst_43 = arith.constant dense<0xFF800000> : vector<16xf32>
    %116 = vector.multi_reduction <maximumf>, %115, %cst_43 [1] : vector<16x16xf32> to vector<16xf32>
    %117 = vector.shape_cast %116 : vector<16xf32> to vector<16x1xf32>
    %118 = vector.broadcast %117 : vector<16x1xf32> to vector<16x16xf32>
    %119 = arith.subf %115, %118 : vector<16x16xf32>
    %120 = math.exp %119 : vector<16x16xf32>
    %cst_44 = arith.constant dense<0.000000e+00> : vector<16xf32>
    %121 = vector.multi_reduction <add>, %120, %cst_44 [1] : vector<16x16xf32> to vector<16xf32>
    %122 = vector.shape_cast %121 : vector<16xf32> to vector<16x1xf32>
    %123 = vector.broadcast %122 : vector<16x1xf32> to vector<16x16xf32>
    %124 = arith.divf %120, %123 : vector<16x16xf32>
    %125 = arith.truncf %124 : vector<16x16xf32> to vector<16x16xbf16>
    %cst_45 = arith.constant dense<0.000000e+00> : vector<16x128xf32>
    %126 = tpu.matmul %125, %114, %cst_45 {dimension_numbers = #tpu.dot_dimension_numbers<[1], [0], [0], [1], [0, 0, 1, 1], [], []>} : vector<16x16xbf16>, vector<16x128xbf16>, vector<16x128xf32> -> vector<16x128xf32>
    %c0_46 = arith.constant 0 : index
    %c384 = arith.constant 384 : index
    %c0_47 = arith.constant 0 : index
    %127 = vector.load %arg6[%c0_46, %c384, %c0_47] : memref<1x512x128xbf16, #tpu.memory_space<vmem>>, vector<1x128x128xbf16>
    %128 = vector.shape_cast %127 : vector<1x128x128xbf16> to vector<128x128xbf16>
    %129 = arith.truncf %126 : vector<16x128xf32> to vector<16x128xbf16>
    %cst_48 = arith.constant dense<0.000000e+00> : vector<16x128xf32>
    %130 = tpu.matmul %129, %128, %cst_48 {dimension_numbers = #tpu.dot_dimension_numbers<[1], [0], [0], [1], [0, 0, 1, 1], [], []>} : vector<16x128xbf16>, vector<128x128xbf16>, vector<16x128xf32> -> vector<16x128xf32>
    %131 = arith.addf %108, %130 : vector<16x128xf32>
    %132 = arith.addf %3, %131 : vector<16x128xf32>
    %c0_49 = arith.constant 0 : index
    %c0_50 = arith.constant 0 : index
    %c0_51 = arith.constant 0 : index
    %133 = vector.load %arg8[%c0_49, %c0_50, %c0_51] : memref<1x1x128xf32, #tpu.memory_space<vmem>>, vector<1x1x128xf32>
    %134 = vector.shape_cast %133 : vector<1x1x128xf32> to vector<1x128xf32>
    %c0_52 = arith.constant 0 : index
    %c0_53 = arith.constant 0 : index
    %c0_54 = arith.constant 0 : index
    %135 = vector.load %arg9[%c0_52, %c0_53, %c0_54] : memref<1x1x128xf32, #tpu.memory_space<vmem>>, vector<1x1x128xf32>
    %136 = vector.shape_cast %135 : vector<1x1x128xf32> to vector<1x128xf32>
    %cst_55 = arith.constant dense<0.000000e+00> : vector<16xf32>
    %137 = vector.multi_reduction <add>, %132, %cst_55 [1] : vector<16x128xf32> to vector<16xf32>
    %138 = vector.shape_cast %137 : vector<16xf32> to vector<16x1xf32>
    %cst_56 = arith.constant 1.280000e+02 : f32
    %139 = vector.broadcast %cst_56 : f32 to vector<16x1xf32>
    %140 = arith.divf %138, %139 : vector<16x1xf32>
    %141 = vector.broadcast %140 : vector<16x1xf32> to vector<16x128xf32>
    %142 = arith.subf %132, %141 : vector<16x128xf32>
    %143 = arith.mulf %142, %142 : vector<16x128xf32>
    %cst_57 = arith.constant dense<0.000000e+00> : vector<16xf32>
    %144 = vector.multi_reduction <add>, %143, %cst_57 [1] : vector<16x128xf32> to vector<16xf32>
    %145 = vector.shape_cast %144 : vector<16xf32> to vector<16x1xf32>
    %cst_58 = arith.constant 1.280000e+02 : f32
    %146 = vector.broadcast %cst_58 : f32 to vector<16x1xf32>
    %147 = arith.divf %145, %146 : vector<16x1xf32>
    %148 = vector.broadcast %140 : vector<16x1xf32> to vector<16x128xf32>
    %149 = arith.subf %132, %148 : vector<16x128xf32>
    %cst_59 = arith.constant 9.99999974E-6 : f32
    %150 = vector.broadcast %cst_59 : f32 to vector<16x1xf32>
    %151 = arith.addf %147, %150 : vector<16x1xf32>
    %152 = math.rsqrt %151 : vector<16x1xf32>
    %153 = vector.broadcast %152 : vector<16x1xf32> to vector<16x128xf32>
    %154 = arith.mulf %149, %153 : vector<16x128xf32>
    %155 = vector.broadcast %134 : vector<1x128xf32> to vector<16x128xf32>
    %156 = arith.mulf %154, %155 : vector<16x128xf32>
    %157 = vector.broadcast %136 : vector<1x128xf32> to vector<16x128xf32>
    %158 = arith.addf %156, %157 : vector<16x128xf32>
    %159 = arith.truncf %158 : vector<16x128xf32> to vector<16x128xbf16>
    %c0_60 = arith.constant 0 : index
    %c0_61 = arith.constant 0 : index
    %c0_62 = arith.constant 0 : index
    %160 = vector.load %arg10[%c0_60, %c0_61, %c0_62] : memref<1x128x256xbf16, #tpu.memory_space<vmem>>, vector<1x128x256xbf16>
    %161 = vector.shape_cast %160 : vector<1x128x256xbf16> to vector<128x256xbf16>
    %cst_63 = arith.constant dense<0.000000e+00> : vector<16x256xf32>
    %162 = tpu.matmul %159, %161, %cst_63 {dimension_numbers = #tpu.dot_dimension_numbers<[1], [0], [0], [1], [0, 0, 1, 1], [], []>} : vector<16x128xbf16>, vector<128x256xbf16>, vector<16x256xf32> -> vector<16x256xf32>
    %c0_64 = arith.constant 0 : index
    %c0_65 = arith.constant 0 : index
    %c0_66 = arith.constant 0 : index
    %163 = vector.load %arg11[%c0_64, %c0_65, %c0_66] : memref<1x1x256xf32, #tpu.memory_space<vmem>>, vector<1x1x256xf32>
    %164 = vector.shape_cast %163 : vector<1x1x256xf32> to vector<1x256xf32>
    %165 = vector.broadcast %164 : vector<1x256xf32> to vector<16x256xf32>
    %166 = arith.addf %162, %165 : vector<16x256xf32>
    %cst_67 = arith.constant 5.000000e-01 : f32
    %167 = vector.broadcast %cst_67 : f32 to vector<16x256xf32>
    %168 = arith.mulf %167, %166 : vector<16x256xf32>
    %cst_68 = arith.constant 0.707106769 : f32
    %169 = vector.broadcast %cst_68 : f32 to vector<16x256xf32>
    %170 = arith.mulf %166, %169 : vector<16x256xf32>
    %171 = math.erf %170 : vector<16x256xf32>
    %cst_69 = arith.constant 1.000000e+00 : f32
    %172 = vector.broadcast %cst_69 : f32 to vector<16x256xf32>
    %173 = arith.addf %172, %171 : vector<16x256xf32>
    %174 = arith.mulf %168, %173 : vector<16x256xf32>
    %175 = arith.truncf %174 : vector<16x256xf32> to vector<16x256xbf16>
    %c0_70 = arith.constant 0 : index
    %c0_71 = arith.constant 0 : index
    %c0_72 = arith.constant 0 : index
    %176 = vector.load %arg12[%c0_70, %c0_71, %c0_72] : memref<1x256x128xbf16, #tpu.memory_space<vmem>>, vector<1x256x128xbf16>
    %177 = vector.shape_cast %176 : vector<1x256x128xbf16> to vector<256x128xbf16>
    %cst_73 = arith.constant dense<0.000000e+00> : vector<16x128xf32>
    %178 = tpu.matmul %175, %177, %cst_73 {dimension_numbers = #tpu.dot_dimension_numbers<[1], [0], [0], [1], [0, 0, 1, 1], [], []>} : vector<16x256xbf16>, vector<256x128xbf16>, vector<16x128xf32> -> vector<16x128xf32>
    %c0_74 = arith.constant 0 : index
    %c0_75 = arith.constant 0 : index
    %c0_76 = arith.constant 0 : index
    %179 = vector.load %arg13[%c0_74, %c0_75, %c0_76] : memref<1x1x128xf32, #tpu.memory_space<vmem>>, vector<1x1x128xf32>
    %180 = vector.shape_cast %179 : vector<1x1x128xf32> to vector<1x128xf32>
    %181 = vector.broadcast %180 : vector<1x128xf32> to vector<16x128xf32>
    %182 = arith.addf %178, %181 : vector<16x128xf32>
    %183 = arith.addf %132, %182 : vector<16x128xf32>
    %c0_77 = arith.constant 0 : index
    %c0_78 = arith.constant 0 : index
    %184 = vector.load %arg15[%c0_77, %c0_78] : memref<16x128xf32, #tpu.memory_space<vmem>>, vector<16x128xf32>
    tpu.vector_store %arg15[%c0_77, %c0_78], %183 {strides = array<i32>} : memref<16x128xf32, #tpu.memory_space<vmem>>, vector<16x128xf32>,
    %c1_i32 = arith.constant 1 : i32
    %185 = arith.cmpi eq, %arg1, %c1_i32 : i32
    %186 = arith.extui %185 : i1 to i32
    %c0_i32_79 = arith.constant 0 : i32
    %187 = arith.cmpi ne, %186, %c0_i32_79 : i32
    scf.if %187 {
      %c0_80 = arith.constant 0 : index
      %c0_81 = arith.constant 0 : index
      %c0_82 = arith.constant 0 : index
      %188 = vector.load %arg14[%c0_80, %c0_81, %c0_82] : memref<1x16x128xf32, #tpu.memory_space<vmem>>, vector<1x16x128xf32>
      %189 = vector.shape_cast %188 : vector<1x16x128xf32> to vector<16x128xf32>
      %190 = vector.shape_cast %183 : vector<16x128xf32> to vector<1x16x128xf32>
      tpu.vector_store %arg14[%c0_80, %c0_81, %c0_82], %190 {strides = array<i32>} : memref<1x16x128xf32, #tpu.memory_space<vmem>>, vector<1x16x128xf32>,
    } else {
    }
    return
  }
  func.func @transform_0(%arg0: i32, %arg1: i32) -> (i32, i32, i32) {
    %c0_i32 = arith.constant 0 : i32
    %c0_i32_0 = arith.constant 0 : i32
    %c0_i32_1 = arith.constant 0 : i32
    return %arg0, %c0_i32, %c0_i32_0 : i32, i32, i32
  }
  func.func @transform_1(%arg0: i32, %arg1: i32) -> (i32, i32, i32) {
    %c0_i32 = arith.constant 0 : i32
    %c0_i32_0 = arith.constant 0 : i32
    %c0_i32_1 = arith.constant 0 : i32
    return %arg1, %c0_i32, %c0_i32_0 : i32, i32, i32
  }
  func.func @transform_2(%arg0: i32, %arg1: i32) -> (i32, i32, i32) {
    %c0_i32 = arith.constant 0 : i32
    %c0_i32_0 = arith.constant 0 : i32
    %c0_i32_1 = arith.constant 0 : i32
    return %arg1, %c0_i32, %c0_i32_0 : i32, i32, i32
  }
  func.func @transform_3(%arg0: i32, %arg1: i32) -> (i32, i32, i32) {
    %c0_i32 = arith.constant 0 : i32
    %c0_i32_0 = arith.constant 0 : i32
    %c0_i32_1 = arith.constant 0 : i32
    return %arg1, %c0_i32, %c0_i32_0 : i32, i32, i32
  }
  func.func @transform_4(%arg0: i32, %arg1: i32) -> (i32, i32, i32) {
    %c0_i32 = arith.constant 0 : i32
    %c0_i32_0 = arith.constant 0 : i32
    %c0_i32_1 = arith.constant 0 : i32
    return %arg1, %c0_i32, %c0_i32_0 : i32, i32, i32
  }
  func.func @transform_5(%arg0: i32, %arg1: i32) -> (i32, i32, i32) {
    %c0_i32 = arith.constant 0 : i32
    %c0_i32_0 = arith.constant 0 : i32
    %c0_i32_1 = arith.constant 0 : i32
    return %arg1, %c0_i32, %c0_i32_0 : i32, i32, i32
  }
  func.func @transform_6(%arg0: i32, %arg1: i32) -> (i32, i32, i32) {
    %c0_i32 = arith.constant 0 : i32
    %c0_i32_0 = arith.constant 0 : i32
    %c0_i32_1 = arith.constant 0 : i32
    return %arg1, %c0_i32, %c0_i32_0 : i32, i32, i32
  }
  func.func @transform_7(%arg0: i32, %arg1: i32) -> (i32, i32, i32) {
    %c0_i32 = arith.constant 0 : i32
    %c0_i32_0 = arith.constant 0 : i32
    %c0_i32_1 = arith.constant 0 : i32
    return %arg1, %c0_i32, %c0_i32_0 : i32, i32, i32
  }
  func.func @transform_8(%arg0: i32, %arg1: i32) -> (i32, i32, i32) {
    %c0_i32 = arith.constant 0 : i32
    %c0_i32_0 = arith.constant 0 : i32
    %c0_i32_1 = arith.constant 0 : i32
    return %arg1, %c0_i32, %c0_i32_0 : i32, i32, i32
  }
  func.func @transform_9(%arg0: i32, %arg1: i32) -> (i32, i32, i32) {
    %c0_i32 = arith.constant 0 : i32
    %c0_i32_0 = arith.constant 0 : i32
    %c0_i32_1 = arith.constant 0 : i32
    return %arg1, %c0_i32, %c0_i32_0 : i32, i32, i32
  }
  func.func @transform_10(%arg0: i32, %arg1: i32) -> (i32, i32, i32) {
    %c0_i32 = arith.constant 0 : i32
    %c0_i32_0 = arith.constant 0 : i32
    %c0_i32_1 = arith.constant 0 : i32
    return %arg1, %c0_i32, %c0_i32_0 : i32, i32, i32
  }
  func.func @transform_11(%arg0: i32, %arg1: i32) -> (i32, i32, i32) {
    %c0_i32 = arith.constant 0 : i32
    %c0_i32_0 = arith.constant 0 : i32
    %c0_i32_1 = arith.constant 0 : i32
    return %arg1, %c0_i32, %c0_i32_0 : i32, i32, i32
  }
  func.func @transform_12(%arg0: i32, %arg1: i32) -> (i32, i32, i32) {
    %c0_i32 = arith.constant 0 : i32
    %c0_i32_0 = arith.constant 0 : i32
    %c0_i32_1 = arith.constant 0 : i32
    return %arg0, %c0_i32, %c0_i32_0 : i32, i32, i32
  }
}

</mosaic_0001>

<bundles_post_ra>
// kernel: tpu_custom_call.1
= control target key start
LH: loop header
LB: loop body
LE: loop exit
PB: predicated region body
PF: predicated region fallthrough
CT: control target
= control target key end

     0   :  { %s5547_s0 = inlined_call_operand.hbm [shape: f32[2,16,128], index: 0, kind: input, shape index: {}]   ;;  %s5548_s1 = inlined_call_operand.hbm [shape: f32[2,1,128], index: 1, kind: input, shape index: {}]   ;;  %s5549_s2 = inlined_call_operand.hbm [shape: f32[2,1,128], index: 2, kind: input, shape index: {}]   ;;  %s5550_s3 = inlined_call_operand.hbm [shape: bf16[2,128,1536], index: 3, kind: input, shape index: {}]   ;;  %s5551_s4 = inlined_call_operand.hbm [shape: bf16[2,512,128], index: 4, kind: input, shape index: {}]   ;;  %s5552_s5 = inlined_call_operand.vmem [shape: f32[2,1,128], index: 5, kind: input, shape index: {}]   ;;  %s5553_s6 = inlined_call_operand.hbm [shape: f32[2,1,128], index: 6, kind: input, shape index: {}]   ;;  %s5554_s7 = inlined_call_operand.hbm [shape: f32[2,1,128], index: 7, kind: input, shape index: {}]   ;;  %s5555_s8 = inlined_call_operand.hbm [shape: bf16[2,128,256], index: 8, kind: input, shape index: {}]   ;;  %s5556_s9 = inlined_call_operand.vmem [shape: f32[2,1,256], index: 9, kind: input, shape index: {}]   ;;  %s5557_s10 = inlined_call_operand.hbm [shape: bf16[2,256,128], index: 10, kind: input, shape index: {}]   ;;  %s5558_s11 = inlined_call_operand.vmem [shape: f32[2,1,128], index: 11, kind: input, shape index: {}]   ;;  %s5559_s12 = inlined_call_operand.hbm [shape: f32[2,16,128], index: 12, kind: output, shape index: {}]  }
   0x1   :  { %5576 = sst [smem:[#allocation36_spill]] %s5547_s0 }
   0x2   :  { %5577 = sst [smem:[#allocation37_spill]] %s5548_s1 }
   0x3   :  { %5578 = sst [smem:[#allocation38_spill]] %s5549_s2 }
   0x4   :  { %5579 = sst [smem:[#allocation39_spill]] %s5550_s3 }
   0x5   :  { %5580 = sst [smem:[#allocation40_spill]] %s5551_s4 }
   0x6   :  { %5581 = sst [smem:[#allocation41_spill]] %s5552_s5 }
   0x7   :  { %5582 = sst [smem:[#allocation42_spill]] %s5553_s6 }
   0x8   :  { %5583 = sst [smem:[#allocation43_spill]] %s5554_s7 }
   0x9   :  { %5584 = sst [smem:[#allocation44_spill]] %s5555_s8 }
   0xa   :  { %5585 = sst [smem:[#allocation45_spill]] %s5556_s9 }
   0xb   :  { %5586 = sst [smem:[#allocation46_spill]] %s5557_s10 }
   0xc   :  { %5587 = sst [smem:[#allocation47_spill]] %s5558_s11 }
   0xd   :  { %5588 = sst [smem:[#allocation48_spill]] %s5559_s12 }
   0xe   :  { %17 = vsyncpa [#allocation4], 0 }
   0xf   :  { %19 = vsyncpa [#allocation4 + $0x1], 0 }
  0x10   :  { %20 = vsyncpa [#allocation7], 0 }
  0x11   :  { %22 = vsyncpa [#allocation7 + $0x1], 0 }
  0x12   :  { %23 = vsyncpa [#allocation10], 0 }
  0x13   :  { %25 = vsyncpa [#allocation10 + $0x1], 0 }
  0x14   :  { %26 = vsyncpa [#allocation13], 0 }
  0x15   :  { %28 = vsyncpa [#allocation13 + $0x1], 0 }
  0x16   :  { %29 = vsyncpa [#allocation16], 0 }
  0x17   :  { %31 = vsyncpa [#allocation16 + $0x1], 0 }
  0x18   :  { %32 = vsyncpa [#allocation5], 0 }
  0x19   :  { %34 = vsyncpa [#allocation5 + $0x1], 0  ;;  %s4622_s21 = smov 0   ;;  %s4624_s22 = smov 0  }
  0x1a   :  { %s4626_s23 = smov 0   ;;  %s4628_s24 = smov 0  }
  0x1b   :  { %s4630_s25 = smov 0   ;;  %s4632_s26 = smov 0  }
  0x1c   :  { %s4634_s27 = smov 0   ;;  %s4636_s28 = smov 0  }
  0x1d   :  { %s4638_s29 = smov 0   ;;  %s4640_s30 = smov 0  }
  0x1e   :  { %s4642_s13 = smov 0  }
  0x1f LB: > { %5589 = sst [smem:[#allocation25_spill]] %s4514_s23  ;;  %p67_p0 = scmp.eq.s32.totalorder %s4546_s13, 0  ;;  %s4546_s13 = sphi %s4642_s13, %s40_s13   ;;  %s4542_s30 = sphi %s4640_s30, %s5648_s30   ;;  %s4538_s29 = sphi %s4638_s29, %s5654_s29   ;;  %s4534_s28 = sphi %s4636_s28, %s5646_s28   ;;  %s4530_s27 = sphi %s4634_s27, %s5653_s27   ;;  %s4526_s26 = sphi %s4632_s26, %s5645_s26   ;;  %s4522_s25 = sphi %s4630_s25, %s5652_s25   ;;  %s4518_s24 = sphi %s4628_s24, %s5651_s24   ;;  %s4514_s23 = sphi %s4626_s23, %s5643_s23   ;;  %s4510_s22 = sphi %s4624_s22, %s5650_s22   ;;  %s4506_s21 = sphi %s4622_s21, %s5649_s21  }
  0x20   : > { %5590 = sst [smem:[#allocation26_spill]] %s4526_s26  ;;  %p92_p1 = scmp.ne.s32.totalorder %s4514_s23, %s4510_s22 }
  0x21   : > { %5591 = sst [smem:[#allocation27_spill]] %s4530_s27  ;;  %p98_p2 = scmp.ne.s32.totalorder %s4510_s22, %s4506_s21 }
  0x22   : > { %5592 = sst [smem:[#allocation28_spill]] %s4534_s28  ;;  %p5568_p3 = scmp.lt.s32.totalorder %s4546_s13, 4 }
  0x23   : > { %5593 = sst [smem:[#allocation29_spill]] %s4542_s30  ;;  %p94_p4 = por %p92_p1, %p67_p0 }
  0x24   : > { %s4687_s15 = sand.u32 1, %s4546_s13   ;;  %s4690_s16 = sand.u32 1, %s4514_s23  }
  0x25   : > { %s5594_s1 = sld [smem:[#allocation37_spill]]  ;;  %s433_s14 = scalar_lea.vmem [#allocation6], %s4690_s16 }
  0x26   : > { %s440_s12 = sshll.u32 %s433_s14, 4  ;;  %p4699_p5 = pnand %p5568_p3, %p94_p4  ;;  %s441_s12 = int_to_ptr.vmem [resolvable:$true] %s440_s12 }
  0x27   : > { %p3099_p6 = scmp.ge.s32.totalorder %s4546_s13, 1  ;;  %p603_p7 = scmp.lt.s32.totalorder %s4546_s13, 5 }
  0x28   : > { %s3926_s17 = smul.u32 768, %s4690_s16  ;;  %s5562_s18 = scalar_lea.sflag [#allocation7], %s4687_s15 }
  0x29   : > { %p4711_p8 = pnand %p3099_p6, %p603_p7  ;;  %s5598_s3 = sld [smem:[#allocation39_spill]] }
  0x2a   : > { %s5599_s6 = sld [smem:[#allocation42_spill]]  ;;  %s517_s4 = scalar_lea.vmem [#allocation12], %s4690_s16 }
  0x2b   : > { %s436_s19 = scalar_lea.hbm %s5594_s1, %s4538_s29  ;;  %s468_s1 = scalar_lea.vmem [#allocation9], %s3926_s17 }
  0x2c   : > { %s438_s20 = sshll.u32 %s436_s19, 4  ;;  %s3927_s19 = smul.u32 768, %s4538_s29  ;;  %s439_s20 = int_to_ptr.hbm [resolvable:$true] %s438_s20 }
  0x2d   : > { %3955 = dma.hbm_to_vmem [thread:$0]  (!%p4699_p5), %s439_s20, 16, %s441_s12, %s5562_s18  }
  0x2e   : > { %s5596_s14 = scalar_select %p4711_p8, 1, 0 }
  0x2f   : > { %s476_s11 = sshll.u32 %s468_s1, 4  ;;  %s473_s27 = scalar_lea.hbm %s5598_s3, %s3927_s19  ;;  %s477_s11 = int_to_ptr.vmem [resolvable:$true] %s476_s11 }
  0x30   : > { %5597 = sst [smem:[#allocation30_spill]] %s5596_s14  ;;  %s474_s7 = sshll.u32 %s473_s27, 4  ;;  %s475_s7 = int_to_ptr.hbm [resolvable:$true] %s474_s7 }
  0x31   : > { %s5566_s12 = scalar_lea.sflag [#allocation10], %s4687_s15  ;;  %s4548_s20 = smov 768  }
  0x32   : > { %s4549_s18 = smov 48   ;;  %s520_s1 = scalar_lea.hbm %s5599_s6, %s4538_s29 }
  0x33   : > { %3961 = dma.hbm_to_vmem [thread:$0]  (!%p4699_p5), %s475_s7, 12288, %s477_s11, %s5566_s12, %s4548_s20, %s4548_s20, %s4549_s18  }
  0x34   : > { %s524_s2 = sshll.u32 %s517_s4, 4  ;;  %s522_s0 = sshll.u32 %s520_s1, 4  ;;  %s525_s2 = int_to_ptr.vmem [resolvable:$true] %s524_s2  ;;  %s523_s0 = int_to_ptr.hbm [resolvable:$true] %s522_s0 }
  0x35   : > { %s5564_s5 = scalar_lea.sflag [#allocation13], %s4687_s15  ;;  %s3093_s9 = sshll.u32 %s4690_s16, 7 }
  0x36   : > { %3967 = dma.hbm_to_vmem [thread:$0]  (!%p4699_p5), %s523_s0, 16, %s525_s2, %s5564_s5  }
  0x37   : > { %s3763_s27 = sshll.u32 %s4538_s29, 7  ;;  %s5600_s8 = sld [smem:[#allocation44_spill]] }
  0x38   : > { %s552_s14 = scalar_lea.vmem [#allocation15], %s3093_s9  ;;  %s5565_s20 = scalar_lea.sflag [#allocation16], %s4687_s15 }
  0x39   : > { %s560_s4 = sshll.u32 %s552_s14, 4  ;;  %s5567_s0 = smov 128   ;;  %s561_s4 = int_to_ptr.vmem [resolvable:$true] %s560_s4 }
  0x3a   : > { %s5569_s2 = smov 8   ;;  %s5601_s10 = sld [smem:[#allocation46_spill]] }
  0x3b   : > { %s4755_s5 = sadd.s32 4294967295, %s4546_s13   ;;  %p66_p10 = scmp.ne.s32.totalorder %s4526_s26, %s4522_s25 }
  0x3c   : > { %p72_p11 = scmp.ne.s32.totalorder %s4522_s25, %s4518_s24  ;;  %p73_p13 = scmp.eq.s32.totalorder %s4755_s5, 0 }
  0x3d   : > { %s557_s11 = scalar_lea.hbm %s5600_s8, %s3763_s27  ;;  %p4773_p12 = por %p67_p0, %p66_p10 }
  0x3e   : > { %s558_s18 = sshll.u32 %s557_s11, 4  ;;  %s581_s11 = scalar_lea.vmem [#allocation17], %s3093_s9  ;;  %s559_s18 = int_to_ptr.hbm [resolvable:$true] %s558_s18 }
  0x3f   : > { %3973 = dma.hbm_to_vmem [thread:$0]  (!%p4699_p5), %s559_s18, 2048, %s561_s4, %s5565_s20, %s5567_s0, %s5567_s0, %s5569_s2  }
  0x40   : > { %s586_s19 = scalar_lea.hbm %s5601_s10, %s3763_s27  ;;  %s589_s14 = sshll.u32 %s581_s11, 4  ;;  %s4752_s14 = int_to_ptr.vmem [resolvable:$true] %s589_s14 }
  0x41   : > { %s587_s7 = sshll.u32 %s586_s19, 4  ;;  %s3083_s18 = sadd.s32 4294967294, %s4546_s13   ;;  %s4750_s7 = int_to_ptr.hbm [resolvable:$true] %s587_s7 }
  0x42   : > { %s49_s27 = sadd.s32 1, %s4538_s29  ;;  %s52_s4 = sadd.s32 1, %s4542_s30 }
  0x43   : > { %p50_p9 = scmp.ge.s32.totalorder %s49_s27, 2  ;;  %s59_s9 = sadd.s32 1, %s4526_s26 }
  0x44   : > { %p4783_p4 = por %p73_p13, %p72_p11  ;;  %s5606_s11 = sadd.s32 1, %s4514_s23 }
  0x45   : > { %s5656_s27 = smov (%p50_p9, %s49_s27), 0  ;;  %s5658_s4 = smov (!%p50_p9, %s52_s4), %s4542_s30 }
  0x46   : > { %5602 = sst [smem:[#allocation31_spill]] %s5656_s27  ;;  %p54_p1 = scmp.ge.s32.totalorder %s5658_s4, 2 }
  0x47   : > { %s82_s1 = ssub.s32 %s4538_s29, %s5656_s27  ;;  %p4799_p0 = por %p98_p2, %p73_p13 }
  0x48   : > { %p83_p6 = scmp.eq.s32.totalorder %s82_s1, 0  ;;  %s5660_s4 = smov (%p54_p1, %s5658_s4), 0 }
  0x49   : > { %5605 = sst [smem:[#allocation32_spill]] %s5660_s4  ;;  %s56_s12 = ssub.s32 %s4542_s30, %s5660_s4 }
  0x4a   : > { %s4792_s20 = scalar_select %p83_p6, %s4514_s23, %s5606_s11  }
  0x4b   : > { %p57_p7 = scmp.eq.s32.totalorder %s56_s12, 0  ;;  %p382_p9 = scmp.eq.s32.totalorder %s4755_s5, 3 }
  0x4c   : > { %5607 = sst [smem:[#allocation33_spill]] %s4792_s20  ;;  %p388_p3 = scmp.eq.s32.totalorder %s3083_s18, 3 }
  0x4d   : > { %s408_s2 = sand.u32 1, %s4526_s26   ;;  %p4811_p1 = por %p382_p9, %p66_p10 }
  0x4e   : > { %s4806_s1 = scalar_select %p57_p7, %s4526_s26, %s59_s9  }
  0x4f   : > { %p4818_p2 = por %p388_p3, %p72_p11  ;;  %s3086_s11 = sshll.u32 %s408_s2, 4 }
  0x50   : > { %5609 = sst [smem:[#allocation34_spill]] %s4806_s1  ;;  %s3761_s6 = sshll.u32 %s4542_s30, 4 }
  0x51   : > { %s5611_s21 = scalar_select %p4818_p2, 1, 0 }
  0x52   : > { %s5613_s10 = sld [smem:[#allocation36_spill]]  ;;  %s412_s9 = scalar_lea.vmem [#allocation3], %s3086_s11 }
  0x53   : > { %5612 = sst [smem:[#allocation35_spill]] %s5611_s21  ;;  %s420_s4 = sshll.u32 %s412_s9, 4  ;;  %s421_s4 = int_to_ptr.vmem [resolvable:$true] %s420_s4 }
  0x54   : > { %p5614_p3 = scmp.lt.s32.totalorder %s4546_s13, 4  ;;  %s5615_s20 = sld [smem:[#allocation38_spill]] }
  0x55   : > { %s409_s21 = scalar_lea.sflag [#allocation4], %s408_s2  ;;  %s5616_s8 = smov 8  }
  0x56   : > { %p3950_p10 = pnand %p5614_p3, %p4773_p12  ;;  %s5617_s12 = smov 128  }
  0x57   : > { %s3090_s17 = sshll.u32 %s4690_s16, 8  ;;  %s5618_s11 = scalar_lea.sflag [#allocation7], %s4687_s15 }
  0x58   : > { %s417_s18 = scalar_lea.hbm %s5613_s10, %s3761_s6  ;;  %s450_s6 = scalar_lea.vmem [#allocation8], %s4690_s16 }
  0x59   : > { %s418_s27 = sshll.u32 %s417_s18, 4  ;;  %s457_s10 = sshll.u32 %s450_s6, 4  ;;  %s419_s27 = int_to_ptr.hbm [resolvable:$true] %s418_s27  ;;  %s458_s10 = int_to_ptr.vmem [resolvable:$true] %s457_s10 }
  0x5a   : > { %s453_s30 = scalar_lea.hbm %s5615_s20, %s4538_s29  ;;  %s3762_s26 = sshll.u32 %s4538_s29, 8 }
  0x5b   : > { %s455_s23 = sshll.u32 %s453_s30, 4  ;;  %s5619_s2 = sld [smem:[#allocation40_spill]]  ;;  %s456_s23 = int_to_ptr.hbm [resolvable:$true] %s455_s23 }
  0x5c   : > { %3952 = dma.hbm_to_vmem [thread:$0]  (!%p3950_p10), %s419_s27, 256, %s421_s4, %s409_s21, %s5617_s12, %s5617_s12, %s5616_s8  }
  0x5d   : > { %3958 = dma.hbm_to_vmem [thread:$0]  (!%p4699_p5), %s456_s23, 16, %s458_s10, %s5618_s11  }
  0x5e   : > { %s490_s27 = scalar_lea.vmem [#allocation11], %s3090_s17  ;;  %s4552_s18 = smov 64  }
  0x5f   : > { %s498_s4 = sshll.u32 %s490_s27, 4  ;;  %s4553_s9 = smov 4   ;;  %s499_s4 = int_to_ptr.vmem [resolvable:$true] %s498_s4 }
  0x60   : > { %s5620_s23 = scalar_lea.sflag [#allocation10], %s4687_s15  ;;  %s5621_s6 = sld [smem:[#allocation43_spill]] }
  0x61   : > { %s495_s1 = scalar_lea.hbm %s5619_s2, %s3762_s26  ;;  %s534_s11 = scalar_lea.vmem [#allocation14], %s4690_s16 }
  0x62   : > { %s496_s21 = sshll.u32 %s495_s1, 4  ;;  %s541_s26 = sshll.u32 %s534_s11, 4  ;;  %s497_s21 = int_to_ptr.hbm [resolvable:$true] %s496_s21  ;;  %s542_s26 = int_to_ptr.vmem [resolvable:$true] %s541_s26 }
  0x63   : > { %3964 = dma.hbm_to_vmem [thread:$0]  (!%p4699_p5), %s497_s21, 4096, %s499_s4, %s5620_s23, %s4552_s18, %s4552_s18, %s4553_s9  }
  0x64   : > { %s5622_s17 = scalar_lea.sflag [#allocation13], %s4687_s15  ;;  %s5623_s30 = scalar_lea.sflag [#allocation16], %s4687_s15 }
  0x65   : > { %3976 = dma.hbm_to_vmem [thread:$0]  (!%p4699_p5), %s4750_s7, 2048, %s4752_s14, %s5623_s30, %s4552_s18, %s4552_s18, %s4553_s9  }
  0x66   : > { %s537_s10 = scalar_lea.hbm %s5621_s6, %s4538_s29  ;;  %607 = sbr.rel (%p4711_p8) target bundleno = 2341 (0x925), region = 68 }
  0x67   : > { %s539_s20 = sshll.u32 %s537_s10, 4  ;;  %s4869_s1 = sand.u32 (!%p4711_p8), 1, %s4522_s25   ;;  %s540_s20 = int_to_ptr.hbm [resolvable:$true] %s539_s20 }
  0x68   : > { %3970 = dma.hbm_to_vmem [thread:$0]  (!%p4699_p5), %s540_s20, 16, %s542_s26, %s5622_s17  }
  0x69   : > { %s3100_s16 = sshll.u32 (!%p4711_p8), %s4869_s1, 4  ;;  %s610_s27 = scalar_lea.sflag (!%p4711_p8), [#allocation4], %s4869_s1 }
  0x6a   : > { %s4875_s4 = scalar_lea.vmem (!%p4711_p8), [#allocation3], %s3100_s16 }
  0x6b   : > { %4481 = dma.done.wait (%p4783_p4), %s610_s27, 256  }
  0x6c   : > { %4483 = vsyncadd (%p4783_p4), %s610_s27, 4294967040  ;;  %s619_s28 = sand.u32 1, %s4755_s5   ;;  %s4883_s15 = sand.u32 1, %s4510_s22  }
  0x6d   : > { %s620_s7 = scalar_lea.sflag [#allocation7], %s619_s28 }
  0x6e   : > { %4485 = dma.done.wait (%p4799_p0), %s620_s7, 32  }
  0x6f   : > { %4487 = vsyncadd (%p4799_p0), %s620_s7, 4294967264  ;;  %s3928_s21 = smul.u32 768, %s4883_s15  ;;  %s638_s18 = scalar_lea.sflag [#allocation10], %s619_s28 }
  0x71   : > { %s4892_s9 = scalar_lea.vmem [#allocation9], %s3928_s21 }
  0x72   : > { %4489 = dma.done.wait (%p4799_p0), %s638_s18, 16384  }
  0x73   : > { %4491 = vsyncadd (%p4799_p0), %s638_s18, 4294950912  ;;  %s3101_s5 = sshll.u32 %s4883_s15, 8  ;;  %s658_s8 = scalar_lea.sflag [#allocation13], %s619_s28 }
  0x74   : > { %s4899_s23 = scalar_lea.vmem [#allocation11], %s3101_s5 }
  0x75   : > { %4493 = dma.done.wait (%p4799_p0), %s658_s8, 32  }
  0x76   : > { %4495 = vsyncadd (%p4799_p0), %s658_s8, 4294967264  ;;  %s3102_s6 = sshll.u32 %s4883_s15, 7  ;;  %s676_s11 = scalar_lea.sflag [#allocation16], %s619_s28 }
  0x77   : > { %s4908_s26 = scalar_lea.vmem [#allocation15], %s3102_s6 }
  0x78   : > { %4497 = dma.done.wait (%p4799_p0), %s676_s11, 4096  }
  0x79   : > { %4499 = vsyncadd (%p4799_p0), %s676_s11, 4294963200  ;;  %s5625_s20 = sld [smem:[#allocation27_spill]]  ;;  %s4932_s19 = scalar_lea.vmem [#allocation17], %s3102_s6 }
  0x7a   : > { %s5626_s27 = sld [smem:[#allocation41_spill]]  ;;  %s4936_s14 = scalar_lea.vmem [#allocation18], %s3100_s16 }
  0x7b   : > { %s5627_s5 = sld [smem:[#allocation45_spill]] }
  0x7c   : > { %s5628_s10 = sld [smem:[#allocation47_spill]] }
  0x7f   : > { %p777_p5 = scmp.lt.s32.totalorder %s5625_s20, 1  ;;  %p3106_p8 = scmp.ne.s32.totalorder %s5625_s20, 0 }
  0x81   : > { %s4916_s17 = scalar_select %p777_p5, %s5625_s20, 1 }
  0x82   : > { %791 = sbr.rel (%p3106_p8) target bundleno = 138 (0x8a), region = 108 }
  0x83   : > { %s779_s28 = scalar_lea.vmem %s5626_s27, %s4916_s17  ;;  %s3105_s7 = sshll.u32 %s4916_s17, 1 }
  0x84   : > { %s4926_s8 = scalar_lea.vmem %s5627_s5, %s3105_s7  ;;  %s786_s12 = scalar_lea.vmem %s5628_s10, %s4916_s17 }
  0x87   : > { %v792_v0 = vld [vmem:[%s4875_s4] sm:$0xff]  ;;  %v793_v1 = vld [vmem:[%s4875_s4 + $0x8] sm:$0xff] }
  0x88   : > { %794 = vst [vmem:[#allocation2] sm:$0xff] %v792_v0 }
  0x89   : > { %795 = vst [vmem:[#allocation2 + $0x8] sm:$0xff] %v793_v1 }
  0x8a PF: > { %v4554_v4 = vmov 128.0   ;;  %v3445_v8 = vld [vmem:[%s4892_s9 + $0x2a0] sm:$0xf]  ;;  %v3855_v9 = vld [vmem:[%s4892_s9 + $0x2cc] sm:$0xf0]  ;;  %s5629_s16 = scalar_lea.vmem [#allocation6], %s4883_s15 }
  0x8b   : > { %4086 = vrcp.f32 %v4554_v4  ;;  %v3849_v10 = vld [vmem:[%s4892_s9 + $0x2a4] sm:$0xf]  ;;  %v3446_v11 = vor.u32 %v3855_v9, %v3445_v8  ;;  %v3447_v12 = vld [vmem:[%s4892_s9 + $0x2d0] sm:$0xf0]  ;;  %v3453_v13 = vld [vmem:[%s4892_s9 + $0x2a8] sm:$0xf] }
  0x8c   : > { %v3856_v14 = vld [vmem:[%s4892_s9 + $0x2d4] sm:$0xf0]  ;;  %v3450_v15 = vor.u32 %v3849_v10, %v3447_v12  ;;  %v3850_v17 = vld [vmem:[%s4892_s9 + $0x2ac] sm:$0xf]  ;;  %v3455_v18 = vld [vmem:[%s4892_s9 + $0x2d8] sm:$0xf0] }
  0x8d   : > { %v3454_v16 = vor.u32 %v3856_v14, %v3453_v13  ;;  %v3397_v19 = vld [vmem:[%s4892_s9 + $0x240] sm:$0xf]  ;;  %1434 = vmatpush.bf16.msra.mxu0 %v3446_v11  ;;  %v3458_v20 = vor.u32 %v3850_v17, %v3455_v18  ;;  %v3843_v21 = vld [vmem:[%s4892_s9 + $0x26c] sm:$0xf0]  ;;  %v3837_v22 = vld [vmem:[%s4892_s9 + $0x244] sm:$0xf] }
  0x8e   : > { %v3399_v23 = vld [vmem:[%s4892_s9 + $0x270] sm:$0xf0]  ;;  %1448 = vmatpush.bf16.msra.mxu1 %v3450_v15  ;;  %v3398_v24 = vor.u32 %v3843_v21, %v3397_v19  ;;  %v3405_v26 = vld [vmem:[%s4892_s9 + $0x248] sm:$0xf]  ;;  %v3844_v27 = vld [vmem:[%s4892_s9 + $0x274] sm:$0xf0] }
  0x8f   : > { %v4941_v2 = vld [vmem:[#allocation2] sm:$0xff]  ;;  %1462 = vmatpush.bf16.msra.mxu2 %v3454_v16  ;;  %v3402_v25 = vor.u32 %v3837_v22, %v3399_v23  ;;  %1476 = vmatpush.bf16.msra.mxu3 %v3458_v20  ;;  %v3406_v29 = vor.u32 %v3844_v27, %v3405_v26  ;;  %v3407_v30 = vld [vmem:[%s4892_s9 + $0x278] sm:$0xf0]  ;;  %v3349_v31 = vld [vmem:[%s4892_s9 + $0x1e0] sm:$0xf]  ;;  %s5630_s4 = scalar_lea.vmem [#allocation8], %s4883_s15 }
  0x90   : > { %800 = vadd.xlane.f32.xlu0 %v4941_v2  ;;  %v4944_v3 = vld [vmem:[#allocation2 + $0x8] sm:$0xff]  ;;  %v3838_v28 = vld [vmem:[%s4892_s9 + $0x24c] sm:$0xf]  ;;  %v3831_v32 = vld [vmem:[%s4892_s9 + $0x20c] sm:$0xf0]  ;;  %vm1623_vm7 = vcmask 130048  }
  0x91   : > { %v4947_v5 = vpop.eup %4086  ;;  %v3410_v33 = vor.u32 %v3838_v28, %v3407_v30  ;;  %v3825_v34 = vld [vmem:[%s4892_s9 + $0x1e4] sm:$0xf]  ;;  %v3351_v35 = vld [vmem:[%s4892_s9 + $0x210] sm:$0xf0]  ;;  %v3357_v36 = vld [vmem:[%s4892_s9 + $0x1e8] sm:$0xf]  ;;  %1435 = vmatpush.bf16.msra.mxu0 %v3398_v24  ;;  %v3350_v38 = vor.u32 %v3831_v32, %v3349_v31 }
  0x92   : > { %v805_v6 = vmul.f32 128.0, %v4947_v5  ;;  %v3832_v39 = vld [vmem:[%s4892_s9 + $0x214] sm:$0xf0]  ;;  %v3826_v40 = vld [vmem:[%s4892_s9 + $0x1ec] sm:$0xf]  ;;  %1449 = vmatpush.bf16.msra.mxu1 %v3402_v25  ;;  %v3354_v42 = vor.u32 %v3825_v34, %v3351_v35  ;;  %vm809_vm0 = vweird.f32 %v4947_v5  ;;  %s5637_s30 = sld [smem:[#allocation27_spill]] }
  0x93   : > { %v3359_v41 = vld [vmem:[%s4892_s9 + $0x218] sm:$0xf0]  ;;  %1463 = vmatpush.bf16.msra.mxu2 %v3406_v29  ;;  %v3358_v43 = vor.u32 %v3832_v39, %v3357_v36  ;;  %v3301_v44 = vld [vmem:[%s4892_s9 + $0x180] sm:$0xf]  ;;  %v3819_v45 = vld [vmem:[%s4892_s9 + $0x1ac] sm:$0xf0]  ;;  %1477 = vmatpush.bf16.msra.mxu3 %v3410_v33 }
  0x94   : > { %v806_v7 = vsub.f32 1.0, %v805_v6  ;;  %v3813_v46 = vld [vmem:[%s4892_s9 + $0x184] sm:$0xf]  ;;  %v3362_v47 = vor.u32 %v3826_v40, %v3359_v41  ;;  %v3303_v48 = vld [vmem:[%s4892_s9 + $0x1b0] sm:$0xf0]  ;;  %v3302_v54 = vor.u32 %v3819_v45, %v3301_v44 }
  0x95   : > { %v3309_v49 = vld [vmem:[%s4892_s9 + $0x188] sm:$0xf]  ;;  %v3820_v50 = vld [vmem:[%s4892_s9 + $0x1b4] sm:$0xf0]  ;;  %v3814_v51 = vld [vmem:[%s4892_s9 + $0x18c] sm:$0xf]  ;;  %1436 = vmatpush.bf16.msra.mxu0 %v3350_v38  ;;  %v3306_v55 = vor.u32 %v3813_v46, %v3303_v48 }
  0x96   : > { %v807_v37 = vmul.f32 %v4947_v5, %v806_v7  ;;  %v3311_v52 = vld [vmem:[%s4892_s9 + $0x1b8] sm:$0xf0]  ;;  %1450 = vmatpush.bf16.msra.mxu1 %v3354_v42  ;;  %v3310_v56 = vor.u32 %v3820_v50, %v3309_v49  ;;  %v3253_v57 = vld [vmem:[%s4892_s9 + $0x120] sm:$0xf]  ;;  %v3807_v58 = vld [vmem:[%s4892_s9 + $0x14c] sm:$0xf0] }
  0x97   : > { %1464 = vmatpush.bf16.msra.mxu2 %v3358_v43  ;;  %v3801_v59 = vld [vmem:[%s4892_s9 + $0x124] sm:$0xf]  ;;  %1478 = vmatpush.bf16.msra.mxu3 %v3362_v47  ;;  %v3314_v60 = vor.u32 %v3814_v51, %v3311_v52  ;;  %v3255_v61 = vld [vmem:[%s4892_s9 + $0x150] sm:$0xf0]  ;;  %v3261_v62 = vld [vmem:[%s4892_s9 + $0x128] sm:$0xf]  ;;  %v3254_v6 = vor.u32 %v3807_v58, %v3253_v57 }
  0x98   : > { %802 = vadd.xlane.f32.xlu0 %v4944_v3  ;;  %v808_v53 = vadd.f32 %v4947_v5, %v807_v37  ;;  %v3808_v63 = vld [vmem:[%s4892_s9 + $0x154] sm:$0xf0]  ;;  %v3802_v0 = vld [vmem:[%s4892_s9 + $0x12c] sm:$0xf]  ;;  %v3263_v1 = vld [vmem:[%s4892_s9 + $0x158] sm:$0xf0]  ;;  %v3258_v7 = vor.u32 %v3801_v59, %v3255_v61 }
  0x99   : > { %1437 = vmatpush.bf16.msra.mxu0 %v3302_v54  ;;  %v3262_v8 = vor.u32 %v3808_v63, %v3261_v62  ;;  %v3266_v10 = vor.u32 %v3802_v0, %v3263_v1  ;;  %v3205_v16 = vld [vmem:[%s4892_s9 + $0xc0] sm:$0xf]  ;;  %v3795_v17 = vld [vmem:[%s4892_s9 + $0xec] sm:$0xf0]  ;;  %v3789_v18 = vld [vmem:[%s4892_s9 + $0xc4] sm:$0xf] }
  0x9a   : > { %v4994_v4 = vsel %vm809_vm0, %v4947_v5, %v808_v53  ;;  %1451 = vmatpush.bf16.msra.mxu1 %v3306_v55  ;;  %v3206_v19 = vor.u32 %v3795_v17, %v3205_v16  ;;  %v3207_v20 = vld [vmem:[%s4892_s9 + $0xf0] sm:$0xf0]  ;;  %v3213_v21 = vld [vmem:[%s4892_s9 + $0xc8] sm:$0xf]  ;;  %v3796_v22 = vld [vmem:[%s4892_s9 + $0xf4] sm:$0xf0] }
  0x9b   : > { %1465 = vmatpush.bf16.msra.mxu2 %v3310_v56  ;;  %1479 = vmatpush.bf16.msra.mxu3 %v3314_v60  ;;  %v3210_v23 = vor.u32 %v3789_v18, %v3207_v20  ;;  %v3790_v24 = vld [vmem:[%s4892_s9 + $0xcc] sm:$0xf]  ;;  %v3215_v25 = vld [vmem:[%s4892_s9 + $0xf8] sm:$0xf0]  ;;  %v3157_v27 = vld [vmem:[%s4892_s9 + $0x60] sm:$0xf] }
  0x9c   : > { %v3218_v26 = vor.u32 %v3790_v24, %v3215_v25  ;;  %v3783_v28 = vld [vmem:[%s4892_s9 + $0x8c] sm:$0xf0]  ;;  %v3777_v29 = vld [vmem:[%s4892_s9 + $0x64] sm:$0xf]  ;;  %v3159_v31 = vld [vmem:[%s4892_s9 + $0x90] sm:$0xf0] }
  0x9d   : > { %1438 = vmatpush.bf16.msra.mxu0 %v3254_v6  ;;  %v3158_v30 = vor.u32 %v3783_v28, %v3157_v27  ;;  %v3165_v32 = vld [vmem:[%s4892_s9 + $0x68] sm:$0xf]  ;;  %v3784_v33 = vld [vmem:[%s4892_s9 + $0x94] sm:$0xf0]  ;;  %v3162_v34 = vor.u32 %v3777_v29, %v3159_v31  ;;  %v3778_v36 = vld [vmem:[%s4892_s9 + $0x6c] sm:$0xf] }
  0x9e   : > { %1452 = vmatpush.bf16.msra.mxu1 %v3258_v7  ;;  %v3166_v35 = vor.u32 %v3784_v33, %v3165_v32  ;;  %v3167_v37 = vld [vmem:[%s4892_s9 + $0x98] sm:$0xf0]  ;;  %v3109_v39 = vld [vmem:[%s4892_s9] sm:$0xf]  ;;  %v3771_v40 = vld [vmem:[%s4892_s9 + $0x2c] sm:$0xf0] }
  0x9f   : > { %1466 = vmatpush.bf16.msra.mxu2 %v3262_v8  ;;  %1480 = vmatpush.bf16.msra.mxu3 %v3266_v10  ;;  %v3170_v38 = vor.u32 %v3778_v36, %v3167_v37  ;;  %v3765_v41 = vld [vmem:[%s4892_s9 + $0x4] sm:$0xf]  ;;  %v3110_v42 = vor.u32 %v3771_v40, %v3109_v39  ;;  %v3111_v43 = vld [vmem:[%s4892_s9 + $0x30] sm:$0xf0]  ;;  %v3117_v44 = vld [vmem:[%s4892_s9 + $0x8] sm:$0xf] }
  0xa0   : > { %v3772_v45 = vld [vmem:[%s4892_s9 + $0x34] sm:$0xf0]  ;;  %v3114_v46 = vor.u32 %v3765_v41, %v3111_v43  ;;  %v3766_v48 = vld [vmem:[%s4892_s9 + $0xc] sm:$0xf]  ;;  %v3119_v49 = vld [vmem:[%s4892_s9 + $0x38] sm:$0xf0] }
  0xa1   : > { %1439 = vmatpush.bf16.msra.mxu0 %v3206_v19  ;;  %v3118_v47 = vor.u32 %v3772_v45, %v3117_v44  ;;  %v3461_v50 = vld [vmem:[%s4892_s9 + $0x2b0] sm:$0xf]  ;;  %v3122_v51 = vor.u32 %v3766_v48, %v3119_v49  ;;  %v3857_v52 = vld [vmem:[%s4892_s9 + $0x2dc] sm:$0xf0]  ;;  %v3851_v53 = vld [vmem:[%s4892_s9 + $0x2b4] sm:$0xf] }
  0xa2   : > { %1453 = vmatpush.bf16.msra.mxu1 %v3210_v23  ;;  %v3463_v54 = vld [vmem:[%s4892_s9 + $0x2e0] sm:$0xf0]  ;;  %v3462_v55 = vor.u32 %v3857_v52, %v3461_v50  ;;  %v3469_v57 = vld [vmem:[%s4892_s9 + $0x2b8] sm:$0xf]  ;;  %v3858_v58 = vld [vmem:[%s4892_s9 + $0x2e4] sm:$0xf0] }
  0xa3   : > { %1481 = vmatpush.bf16.msra.mxu3 %v3218_v26  ;;  %v3466_v56 = vor.u32 %v3851_v53, %v3463_v54  ;;  %v3852_v59 = vld [vmem:[%s4892_s9 + $0x2bc] sm:$0xf]  ;;  %v3470_v60 = vor.u32 %v3858_v58, %v3469_v57  ;;  %v3471_v61 = vld [vmem:[%s4892_s9 + $0x2e8] sm:$0xf0]  ;;  %v3413_v62 = vld [vmem:[%s4892_s9 + $0x250] sm:$0xf] }
  0xa4   : > { %v3845_v63 = vld [vmem:[%s4892_s9 + $0x27c] sm:$0xf0]  ;;  %v3474_v0 = vor.u32 %v3852_v59, %v3471_v61  ;;  %v3839_v6 = vld [vmem:[%s4892_s9 + $0x254] sm:$0xf]  ;;  %v3415_v7 = vld [vmem:[%s4892_s9 + $0x280] sm:$0xf0] }
  0xa5   : > { %1440 = vmatpush.bf16.msra.mxu0 %v3158_v30  ;;  %v3414_v1 = vor.u32 %v3845_v63, %v3413_v62  ;;  %v3421_v8 = vld [vmem:[%s4892_s9 + $0x258] sm:$0xf]  ;;  %v3846_v10 = vld [vmem:[%s4892_s9 + $0x284] sm:$0xf0]  ;;  %v3833_v16 = vld [vmem:[%s4892_s9 + $0x21c] sm:$0xf0] }
  0xa6   : > { %1454 = vmatpush.bf16.msra.mxu1 %v3162_v34  ;;  %v3827_v17 = vld [vmem:[%s4892_s9 + $0x1f4] sm:$0xf]  ;;  %v3367_v19 = vld [vmem:[%s4892_s9 + $0x220] sm:$0xf0]  ;;  %v3373_v20 = vld [vmem:[%s4892_s9 + $0x1f8] sm:$0xf] }
  0xa7   : > { %1482 = vmatpush.bf16.msra.mxu3 %v3170_v38  ;;  %v3375_v24 = vld [vmem:[%s4892_s9 + $0x228] sm:$0xf0]  ;;  %v3317_v26 = vld [vmem:[%s4892_s9 + $0x190] sm:$0xf]  ;;  %v3821_v27 = vld [vmem:[%s4892_s9 + $0x1bc] sm:$0xf0] }
  0xa8   : > { %v3815_v28 = vld [vmem:[%s4892_s9 + $0x194] sm:$0xf]  ;;  %v3318_v29 = vor.u32 %v3821_v27, %v3317_v26  ;;  %v3319_v30 = vld [vmem:[%s4892_s9 + $0x1c0] sm:$0xf0]  ;;  %v3325_v31 = vld [vmem:[%s4892_s9 + $0x198] sm:$0xf] }
  0xa9   : > { %1441 = vmatpush.bf16.msra.mxu0 %v3110_v42  ;;  %v3822_v32 = vld [vmem:[%s4892_s9 + $0x1c4] sm:$0xf0]  ;;  %v3322_v33 = vor.u32 %v3815_v28, %v3319_v30  ;;  %v3327_v36 = vld [vmem:[%s4892_s9 + $0x1c8] sm:$0xf0]  ;;  %v3269_v38 = vld [vmem:[%s4892_s9 + $0x130] sm:$0xf] }
  0xaa   : > { %1455 = vmatpush.bf16.msra.mxu1 %v3114_v46  ;;  %v3326_v34 = vor.u32 %v3822_v32, %v3325_v31  ;;  %v3809_v39 = vld [vmem:[%s4892_s9 + $0x15c] sm:$0xf0]  ;;  %v3803_v40 = vld [vmem:[%s4892_s9 + $0x134] sm:$0xf]  ;;  %v3271_v42 = vld [vmem:[%s4892_s9 + $0x160] sm:$0xf0] }
  0xab   : > { %1483 = vmatpush.bf16.msra.mxu3 %v3122_v51  ;;  %v3270_v41 = vor.u32 %v3809_v39, %v3269_v38  ;;  %v3277_v43 = vld [vmem:[%s4892_s9 + $0x138] sm:$0xf]  ;;  %v3810_v44 = vld [vmem:[%s4892_s9 + $0x164] sm:$0xf0]  ;;  %v3274_v45 = vor.u32 %v3803_v40, %v3271_v42  ;;  %v3279_v48 = vld [vmem:[%s4892_s9 + $0x168] sm:$0xf0] }
  0xac   : > { %v3278_v46 = vor.u32 %v3810_v44, %v3277_v43  ;;  %v3221_v50 = vld [vmem:[%s4892_s9 + $0xd0] sm:$0xf]  ;;  %v3797_v51 = vld [vmem:[%s4892_s9 + $0xfc] sm:$0xf0]  ;;  %v3791_v52 = vld [vmem:[%s4892_s9 + $0xd4] sm:$0xf] }
  0xad   : > { %1490 = vmatpush.bf16.msrb.mxu0 %v3462_v55  ;;  %v3222_v53 = vor.u32 %v3797_v51, %v3221_v50  ;;  %v3223_v54 = vld [vmem:[%s4892_s9 + $0x100] sm:$0xf0]  ;;  %v3229_v55 = vld [vmem:[%s4892_s9 + $0xd8] sm:$0xf]  ;;  %v3792_v59 = vld [vmem:[%s4892_s9 + $0xdc] sm:$0xf] }
  0xae   : > { %1504 = vmatpush.bf16.msrb.mxu1 %v3466_v56  ;;  %v3798_v56 = vld [vmem:[%s4892_s9 + $0x104] sm:$0xf0]  ;;  %v3226_v57 = vor.u32 %v3791_v52, %v3223_v54  ;;  %v3173_v63 = vld [vmem:[%s4892_s9 + $0x70] sm:$0xf]  ;;  %v3135_v26 = vld [vmem:[%s4892_s9 + $0x48] sm:$0xf0] }
  0xaf   : > { %1532 = vmatpush.bf16.msrb.mxu3 %v3474_v0  ;;  %v3230_v58 = vor.u32 %v3798_v56, %v3229_v55  ;;  %v3785_v0 = vld [vmem:[%s4892_s9 + $0x9c] sm:$0xf0]  ;;  %v4080_v43 = vld [vmem:[%s5629_s16] ss:$0 sm:$0xff]  ;;  %v3859_v52 = vld [vmem:[%s4892_s9 + $0x2ec] sm:$0xf0] }
  0xb0   : > { %v3477_v51 = vld [vmem:[%s4892_s9 + $0x2c0] sm:$0xf]  ;;  %v3485_v54 = vld [vmem:[%s4892_s9 + $0x2c8] sm:$0xf]  ;;  %p3755_p11 = scmp.ne.s32.totalorder %s5637_s30, 1 }
  0xb1   : > { %1491 = vmatpush.bf16.msrb.mxu0 %v3414_v1  ;;  %v3779_v1 = vld [vmem:[%s4892_s9 + $0x74] sm:$0xf] }
 0x103   : > { %v801_v9 = vpop.xlane.xlu0 %800 }
 0x104   : > { %v811_v11 = vmul.f32 %v4994_v4, %v801_v9  ;;  %v3418_v9 = vor.u32 %v3839_v6, %v3415_v7  ;;  %v3174_v7 = vor.u32 %v3785_v0, %v3173_v63  ;;  %v3847_v63 = vld [vmem:[%s4892_s9 + $0x28c] sm:$0xf0] }
 0x106   : > { %v4998_v12 = vsub.f32 %v4941_v2, %v811_v11  ;;  %v3840_v11 = vld [vmem:[%s4892_s9 + $0x25c] sm:$0xf]  ;;  %1505 = vmatpush.bf16.msrb.mxu1 %v3418_v9  ;;  %v3181_v9 = vld [vmem:[%s4892_s9 + $0x78] sm:$0xf] }
 0x108   : > { %v815_v5 = vmul.f32 %v4998_v12, %v4998_v12 }
 0x10a   : > { %817 = vadd.xlane.f32.xlu1 %v815_v5  ;;  %v3423_v5 = vld [vmem:[%s4892_s9 + $0x288] sm:$0xf0] }
 0x10b   : > { %v803_v13 = vpop.xlane.xlu0 %802 }
 0x10c   : > { %v812_v14 = vmul.f32 %v4994_v4, %v803_v13  ;;  %v3422_v13 = vor.u32 %v3846_v10, %v3421_v8  ;;  %v3175_v8 = vld [vmem:[%s4892_s9 + $0xa0] sm:$0xf0]  ;;  %v3786_v10 = vld [vmem:[%s4892_s9 + $0xa4] sm:$0xf0] }
 0x10e   : > { %v5004_v15 = vsub.f32 %v4944_v3, %v812_v14  ;;  %v3214_v3 = vor.u32 %v3796_v22, %v3213_v21  ;;  %v3426_v14 = vor.u32 %v3840_v11, %v3423_v5  ;;  %v3834_v21 = vld [vmem:[%s4892_s9 + $0x224] sm:$0xf0]  ;;  %v3370_v22 = vor.u32 %v3827_v17, %v3367_v19  ;;  %v3125_v17 = vld [vmem:[%s4892_s9 + $0x10] sm:$0xf]  ;;  %v3767_v19 = vld [vmem:[%s4892_s9 + $0x14] sm:$0xf] }
 0x10f   : > { %v3374_v23 = vor.u32 %v3834_v21, %v3373_v20  ;;  %v3178_v11 = vor.u32 %v3779_v1, %v3175_v8  ;;  %v3182_v5 = vor.u32 %v3786_v10, %v3181_v9  ;;  %v3127_v21 = vld [vmem:[%s4892_s9 + $0x40] sm:$0xf0]  ;;  %v3437_v8 = vld [vmem:[%s4892_s9 + $0x268] sm:$0xf]  ;;  %v3848_v9 = vld [vmem:[%s4892_s9 + $0x294] sm:$0xf0] }
 0x110   : > { %v816_v2 = vmul.f32 %v5004_v15, %v5004_v15  ;;  %1467 = vmatpush.bf16.msra.mxu2 %v3214_v3  ;;  %v3828_v3 = vld [vmem:[%s4892_s9 + $0x1fc] sm:$0xf]  ;;  %1533 = vmatpush.bf16.msrb.mxu3 %v3426_v14  ;;  %v3183_v14 = vld [vmem:[%s4892_s9 + $0xa8] sm:$0xf0] }
 0x111   : > { %v3378_v25 = vor.u32 %v3828_v3, %v3375_v24  ;;  %1506 = vmatpush.bf16.msrb.mxu1 %v3370_v22  ;;  %v3133_v22 = vld [vmem:[%s4892_s9 + $0x18] sm:$0xf]  ;;  %v3130_v3 = vor.u32 %v3767_v19, %v3127_v21  ;;  %v3842_v10 = vld [vmem:[%s4892_s9 + $0x26c] sm:$0xf]  ;;  %v3383_v19 = vld [vmem:[%s4892_s9 + $0x230] sm:$0xf0] }
 0x112   : > { %819 = vadd.xlane.f32.xlu1 %v816_v2  ;;  %v3365_v2 = vld [vmem:[%s4892_s9 + $0x1f0] sm:$0xf]  ;;  %v3836_v21 = vld [vmem:[%s4892_s9 + $0x234] sm:$0xf0] }
 0x113   : > { %v3366_v18 = vor.u32 %v3833_v16, %v3365_v2 }
 0x114   : > { %1468 = vmatpush.bf16.msra.mxu2 %v3166_v35  ;;  %v3816_v35 = vld [vmem:[%s4892_s9 + $0x19c] sm:$0xf]  ;;  %1534 = vmatpush.bf16.msrb.mxu3 %v3378_v25 }
 0x115   : > { %1492 = vmatpush.bf16.msrb.mxu0 %v3366_v18  ;;  %v3330_v37 = vor.u32 %v3816_v35, %v3327_v36  ;;  %1507 = vmatpush.bf16.msrb.mxu1 %v3322_v33  ;;  %v3773_v18 = vld [vmem:[%s4892_s9 + $0x3c] sm:$0xf0]  ;;  %v3768_v25 = vld [vmem:[%s4892_s9 + $0x1c] sm:$0xf] }
 0x116   : > { %v3126_v20 = vor.u32 %v3773_v18, %v3125_v17  ;;  %v3138_v28 = vor.u32 %v3768_v25, %v3135_v26  ;;  %v3829_v18 = vld [vmem:[%s4892_s9 + $0x204] sm:$0xf]  ;;  %v3333_v25 = vld [vmem:[%s4892_s9 + $0x1a0] sm:$0xf]  ;;  %v3823_v26 = vld [vmem:[%s4892_s9 + $0x1cc] sm:$0xf0] }
 0x118   : > { %1469 = vmatpush.bf16.msra.mxu2 %v3118_v47  ;;  %v3804_v47 = vld [vmem:[%s4892_s9 + $0x13c] sm:$0xf]  ;;  %1535 = vmatpush.bf16.msrb.mxu3 %v3330_v37 }
 0x119   : > { %1493 = vmatpush.bf16.msrb.mxu0 %v3318_v29  ;;  %v3282_v49 = vor.u32 %v3804_v47, %v3279_v48  ;;  %1508 = vmatpush.bf16.msrb.mxu1 %v3274_v45  ;;  %v4081_v47 = vld [vmem:[%s5630_s4] ss:$0 sm:$0xff] }
 0x11c   : > { %1518 = vmatpush.bf16.msrb.mxu2 %v3470_v60  ;;  %v3231_v60 = vld [vmem:[%s4892_s9 + $0x108] sm:$0xf0]  ;;  %1536 = vmatpush.bf16.msrb.mxu3 %v3282_v49 }
 0x11d   : > { %1494 = vmatpush.bf16.msrb.mxu0 %v3270_v41  ;;  %v3234_v61 = vor.u32 %v3792_v59, %v3231_v60  ;;  %1509 = vmatpush.bf16.msrb.mxu1 %v3226_v57  ;;  %v3860_v57 = vld [vmem:[%s4892_s9 + $0x2f4] sm:$0xf0]  ;;  %v3487_v59 = vld [vmem:[%s4892_s9 + $0x2f8] sm:$0xf0] }
 0x11e   : > { %v3486_v0 = vor.u32 %v3860_v57, %v3485_v54  ;;  %v3245_v54 = vld [vmem:[%s4892_s9 + $0xe8] sm:$0xf]  ;;  %v3247_v57 = vld [vmem:[%s4892_s9 + $0x118] sm:$0xf0] }
 0x120   : > { %1519 = vmatpush.bf16.msrb.mxu2 %v3422_v13  ;;  %v3780_v13 = vld [vmem:[%s4892_s9 + $0x7c] sm:$0xf]  ;;  %1537 = vmatpush.bf16.msrb.mxu3 %v3234_v61 }
 0x121   : > { %1495 = vmatpush.bf16.msrb.mxu0 %v3222_v53  ;;  %v3186_v16 = vor.u32 %v3780_v13, %v3183_v14  ;;  %1510 = vmatpush.bf16.msrb.mxu1 %v3178_v11  ;;  %v3853_v53 = vld [vmem:[%s4892_s9 + $0x2c4] sm:$0xf]  ;;  %v3439_v11 = vld [vmem:[%s4892_s9 + $0x298] sm:$0xf0]  ;;  %v3381_v14 = vld [vmem:[%s4892_s9 + $0x200] sm:$0xf] }
 0x122   : > { %v3442_v17 = vor.u32 %v3842_v10, %v3439_v11 }
 0x124   : > { %1520 = vmatpush.bf16.msrb.mxu2 %v3374_v23  ;;  %v3774_v23 = vld [vmem:[%s4892_s9 + $0x44] sm:$0xf0]  ;;  %1538 = vmatpush.bf16.msrb.mxu3 %v3186_v16  ;;  %v3438_v16 = vor.u32 %v3848_v9, %v3437_v8  ;;  %v3782_v8 = vld [vmem:[%s4892_s9 + $0x8c] sm:$0xf]  ;;  %v3199_v9 = vld [vmem:[%s4892_s9 + $0xb8] sm:$0xf0] }
 0x125   : > { %1496 = vmatpush.bf16.msrb.mxu0 %v3174_v7  ;;  %v3134_v24 = vor.u32 %v3774_v23, %v3133_v22  ;;  %1511 = vmatpush.bf16.msrb.mxu1 %v3130_v3  ;;  %v3431_v7 = vld [vmem:[%s4892_s9 + $0x290] sm:$0xf0]  ;;  %v3830_v22 = vld [vmem:[%s4892_s9 + $0x20c] sm:$0xf]  ;;  %v3391_v23 = vld [vmem:[%s4892_s9 + $0x238] sm:$0xf0] }
 0x128   : > { %1521 = vmatpush.bf16.msrb.mxu2 %v3326_v34  ;;  %1539 = vmatpush.bf16.msrb.mxu3 %v3138_v28  ;;  %v3394_v28 = vor.u32 %v3830_v22, %v3391_v23 }
 0x129   : > { %1497 = vmatpush.bf16.msrb.mxu0 %v3126_v20  ;;  %v3389_v20 = vld [vmem:[%s4892_s9 + $0x208] sm:$0xf] }
 0x12c   : > { %1522 = vmatpush.bf16.msrb.mxu2 %v3278_v46 }
 0x130   : > { %1523 = vmatpush.bf16.msrb.mxu2 %v3230_v58  ;;  %v3854_v58 = vld [vmem:[%s4892_s9 + $0x2cc] sm:$0xf] }
 0x131   : > { %v3490_v1 = vor.u32 %v3854_v58, %v3487_v59 }
 0x134   : > { %1524 = vmatpush.bf16.msrb.mxu2 %v3182_v5 }
 0x138   : > { %1525 = vmatpush.bf16.msrb.mxu2 %v3134_v24  ;;  %v3386_v24 = vor.u32 %v3829_v18, %v3383_v19  ;;  %v3149_v18 = vld [vmem:[%s4892_s9 + $0x28] sm:$0xf]  ;;  %v3776_v19 = vld [vmem:[%s4892_s9 + $0x54] sm:$0xf0] }
 0x17d   : > { %v818_v62 = vpop.xlane.xlu1 %817 }
 0x17e   : > { %v821_v6 = vmul.f32 %v818_v62, %v4994_v4  ;;  %v3429_v62 = vld [vmem:[%s4892_s9 + $0x260] sm:$0xf] }
 0x17f   : > { %v3430_v5 = vor.u32 %v3847_v63, %v3429_v62 }
 0x180   : > { %v823_v2 = vadd.f32 1e-05, %v821_v6  ;;  %v3841_v6 = vld [vmem:[%s4892_s9 + $0x264] sm:$0xf] }
 0x181   : > { %v3434_v13 = vor.u32 %v3841_v6, %v3431_v7  ;;  %v3197_v6 = vld [vmem:[%s4892_s9 + $0x88] sm:$0xf]  ;;  %v3788_v7 = vld [vmem:[%s4892_s9 + $0xb4] sm:$0xf0] }
 0x182   : > { %4088 = vrsqrt.f32 %v823_v2  ;;  %vm831_vm2 = vweird.f32 %v823_v2 }
 0x185   : > { %v820_v27 = vpop.xlane.xlu1 %819 }
 0x186   : > { %v822_v29 = vmul.f32 %v820_v27, %v4994_v4  ;;  %v3390_v27 = vor.u32 %v3836_v21, %v3389_v20  ;;  %v3770_v20 = vld [vmem:[%s4892_s9 + $0x2c] sm:$0xf]  ;;  %v3151_v21 = vld [vmem:[%s4892_s9 + $0x58] sm:$0xf0] }
 0x188   : > { %v4089_v30 = vpop.eup %4088  ;;  %v824_v31 = vadd.f32 1e-05, %v822_v29  ;;  %v3817_v29 = vld [vmem:[%s4892_s9 + $0x1a4] sm:$0xf] }
 0x189   : > { %v826_v32 = vmul.f32 %v4089_v30, %v823_v2  ;;  %vm832_vm1 = vweird.f32 %v4089_v30  ;;  %v3835_v2 = vld [vmem:[%s4892_s9 + $0x22c] sm:$0xf0] }
 0x18a   : > { %4090 = vrsqrt.f32 %v824_v31  ;;  %vm833_vm3 = vmor %vm831_vm2, %vm832_vm1  ;;  %vm841_vm5 = vweird.f32 %v824_v31  ;;  %v3382_v3 = vor.u32 %v3835_v2, %v3381_v14  ;;  %v3198_v14 = vor.u32 %v3788_v7, %v3197_v6 }
 0x18b   : > { %v827_v33 = vmul.f32 %v4089_v30, %v826_v32  ;;  %v3824_v32 = vld [vmem:[%s4892_s9 + $0x1d4] sm:$0xf0]  ;;  %v3202_v2 = vor.u32 %v3782_v8, %v3199_v9 }
 0x18d   : > { %v828_v34 = vmul.f32 0.5, %v827_v33  ;;  %v3818_v33 = vld [vmem:[%s4892_s9 + $0x1ac] sm:$0xf] }
 0x18f   : > { %v829_v35 = vsub.f32 1.5, %v828_v34  ;;  %v3343_v34 = vld [vmem:[%s4892_s9 + $0x1d8] sm:$0xf0] }
 0x190   : > { %v4091_v36 = vpop.eup %4090 }
 0x191   : > { %v830_v37 = vmul.f32 %v4089_v30, %v829_v35  ;;  %v836_v38 = vmul.f32 %v4091_v36, %v824_v31  ;;  %vm842_vm4 = vweird.f32 %v4091_v36  ;;  %v3341_v31 = vld [vmem:[%s4892_s9 + $0x1a8] sm:$0xf]  ;;  %v3334_v35 = vor.u32 %v3823_v26, %v3333_v25 }
 0x192   : > { %vm843_vm6 = vmor %vm841_vm5, %vm842_vm4 }
 0x193   : > { %v837_v39 = vmul.f32 %v4091_v36, %v836_v38  ;;  %v834_v40 = vsel %vm833_vm3, %v4089_v30, %v830_v37  ;;  %v3335_v30 = vld [vmem:[%s4892_s9 + $0x1d0] sm:$0xf0]  ;;  %v3285_v37 = vld [vmem:[%s4892_s9 + $0x140] sm:$0xf]  ;;  %v3811_v38 = vld [vmem:[%s4892_s9 + $0x16c] sm:$0xf0] }
 0x194   : > { %v845_v44 = vmul.f32 %v834_v40, %v4998_v12  ;;  %v3479_v12 = vld [vmem:[%s4892_s9 + $0x2f0] sm:$0xf0]  ;;  %v3346_v40 = vor.u32 %v3818_v33, %v3343_v34 }
 0x195   : > { %v838_v41 = vmul.f32 0.5, %v837_v39  ;;  %v3482_v61 = vor.u32 %v3853_v53, %v3479_v12  ;;  %v3342_v39 = vor.u32 %v3824_v32, %v3341_v31  ;;  %v3793_v53 = vld [vmem:[%s4892_s9 + $0xe4] sm:$0xf]  ;;  %v3239_v12 = vld [vmem:[%s4892_s9 + $0x110] sm:$0xf0] }
 0x196   : > { %v850_v48 = vmul.f32 %v4080_v43, %v845_v44  ;;  %v3812_v44 = vld [vmem:[%s4892_s9 + $0x174] sm:$0xf0]  ;;  %v3242_v59 = vor.u32 %v3793_v53, %v3239_v12 }
 0x197   : > { %v839_v42 = vsub.f32 1.5, %v838_v41  ;;  %v3805_v41 = vld [vmem:[%s4892_s9 + $0x144] sm:$0xf] }
 0x198   : > { %v855_v55 = vadd.f32 %v4081_v47, %v850_v48 }
 0x199   : > { %v840_v45 = vmul.f32 %v4091_v36, %v839_v42  ;;  %v3287_v42 = vld [vmem:[%s4892_s9 + $0x170] sm:$0xf0] }
 0x19a   : > { %v3290_v48 = vor.u32 %v3805_v41, %v3287_v42 }
 0x19b   : > { %v844_v46 = vsel %vm843_vm6, %v4091_v36, %v840_v45  ;;  %v3338_v36 = vor.u32 %v3817_v29, %v3335_v30  ;;  %v3806_v45 = vld [vmem:[%s4892_s9 + $0x14c] sm:$0xf] }
 0x19c   : > { %v846_v49 = vmul.f32 %v844_v46, %v5004_v15  ;;  %v3478_v15 = vor.u32 %v3859_v52, %v3477_v51  ;;  %v3295_v46 = vld [vmem:[%s4892_s9 + $0x178] sm:$0xf0] }
 0x19d   : > { %v3298_v52 = vor.u32 %v3806_v45, %v3295_v46 }
 0x19e   : > { %v851_v50 = vmul.f32 %v4080_v43, %v846_v49  ;;  %v3293_v43 = vld [vmem:[%s4892_s9 + $0x148] sm:$0xf]  ;;  %v3237_v49 = vld [vmem:[%s4892_s9 + $0xe0] sm:$0xf] }
 0x19f   : > { %v3294_v51 = vor.u32 %v3812_v44, %v3293_v43 }
 0x1a0   : > { %v856_v56 = vadd.f32 %v4081_v47, %v851_v50  ;;  %v3286_v47 = vor.u32 %v3811_v38, %v3285_v37  ;;  %v3799_v50 = vld [vmem:[%s4892_s9 + $0x10c] sm:$0xf0] }
 0x1a1   : > { %v3238_v58 = vor.u32 %v3799_v50, %v3237_v49 }
 0x1a2   : > { %v5112_v60 = vpack.c.bf16 %v856_v56, %v855_v55  ;;  %v3800_v55 = vld [vmem:[%s4892_s9 + $0x114] sm:$0xf0]  ;;  %v3794_v56 = vld [vmem:[%s4892_s9 + $0xec] sm:$0xf] }
 0x1a3   : > { %v3246_v62 = vor.u32 %v3800_v55, %v3245_v54  ;;  %v3250_v63 = vor.u32 %v3794_v56, %v3247_v57 }
 0x1a4   : > { %1442 = vmatmul.bf16.vlgmr.msra.gmra.mxu0 %v5112_v60  ;;  %1456 = vmatmul.bf16.vlgmr.msra.gmra.mxu1 %v5112_v60 }
 0x1a5   : > { %1470 = vmatmul.bf16.vlgmr.msra.gmra.mxu2 %v5112_v60  ;;  %1484 = vmatmul.bf16.vlgmr.msra.gmra.mxu3 %v5112_v60 }
 0x1a6   : > { %1546 = vmatpush.bf16.msra.mxu0 %v3478_v15  ;;  %1560 = vmatpush.bf16.msra.mxu1 %v3482_v61  ;;  %v3189_v15 = vld [vmem:[%s4892_s9 + $0x80] sm:$0xf]  ;;  %v3787_v61 = vld [vmem:[%s4892_s9 + $0xac] sm:$0xf0] }
 0x1a7   : > { %1574 = vmatpush.bf16.msra.mxu2 %v3486_v0  ;;  %1588 = vmatpush.bf16.msra.mxu3 %v3490_v1  ;;  %v3781_v0 = vld [vmem:[%s4892_s9 + $0x84] sm:$0xf]  ;;  %v3191_v1 = vld [vmem:[%s4892_s9 + $0xb0] sm:$0xf0]  ;;  %v3190_v10 = vor.u32 %v3787_v61, %v3189_v15 }
 0x1a8   : > { %v3194_v11 = vor.u32 %v3781_v0, %v3191_v1 }
 0x1aa   : > { %1547 = vmatpush.bf16.msra.mxu0 %v3430_v5  ;;  %1561 = vmatpush.bf16.msra.mxu1 %v3434_v13  ;;  %v3141_v5 = vld [vmem:[%s4892_s9 + $0x20] sm:$0xf]  ;;  %v3775_v13 = vld [vmem:[%s4892_s9 + $0x4c] sm:$0xf0] }
 0x1ab   : > { %1575 = vmatpush.bf16.msra.mxu2 %v3438_v16  ;;  %1589 = vmatpush.bf16.msra.mxu3 %v3442_v17  ;;  %v3769_v16 = vld [vmem:[%s4892_s9 + $0x24] sm:$0xf]  ;;  %v3143_v17 = vld [vmem:[%s4892_s9 + $0x50] sm:$0xf0]  ;;  %v3142_v22 = vor.u32 %v3775_v13, %v3141_v5 }
 0x1ac   : > { %v3146_v23 = vor.u32 %v3769_v16, %v3143_v17 }
 0x1ae   : > { %1548 = vmatpush.bf16.msra.mxu0 %v3382_v3  ;;  %1562 = vmatpush.bf16.msra.mxu1 %v3386_v24  ;;  %v3150_v3 = vor.u32 %v3776_v19, %v3149_v18  ;;  %v3154_v24 = vor.u32 %v3770_v20, %v3151_v21 }
 0x1af   : > { %1576 = vmatpush.bf16.msra.mxu2 %v3390_v27  ;;  %1590 = vmatpush.bf16.msra.mxu3 %v3394_v28 }
 0x1b2   : > { %1549 = vmatpush.bf16.msra.mxu0 %v3334_v35  ;;  %1563 = vmatpush.bf16.msra.mxu1 %v3338_v36 }
 0x1b3   : > { %1577 = vmatpush.bf16.msra.mxu2 %v3342_v39  ;;  %1591 = vmatpush.bf16.msra.mxu3 %v3346_v40 }
 0x1b4   : > { %1498 = vmatmul.bf16.vlgmr.msrb.gmra.mxu0 %v5112_v60  ;;  %1512 = vmatmul.bf16.vlgmr.msrb.gmra.mxu1 %v5112_v60 }
 0x1b5   : > { %1526 = vmatmul.bf16.vlgmr.msrb.gmra.mxu2 %v5112_v60  ;;  %1540 = vmatmul.bf16.vlgmr.msrb.gmra.mxu3 %v5112_v60 }
 0x1b6   : > { %1550 = vmatpush.bf16.msra.mxu0 %v3286_v47  ;;  %1564 = vmatpush.bf16.msra.mxu1 %v3290_v48 }
 0x1b7   : > { %1578 = vmatpush.bf16.msra.mxu2 %v3294_v51  ;;  %1592 = vmatpush.bf16.msra.mxu3 %v3298_v52 }
 0x1ba   : > { %1551 = vmatpush.bf16.msra.mxu0 %v3238_v58  ;;  %1565 = vmatpush.bf16.msra.mxu1 %v3242_v59 }
 0x1bb   : > { %1579 = vmatpush.bf16.msra.mxu2 %v3246_v62  ;;  %1593 = vmatpush.bf16.msra.mxu3 %v3250_v63 }
 0x1be   : > { %1552 = vmatpush.bf16.msra.mxu0 %v3190_v10  ;;  %1566 = vmatpush.bf16.msra.mxu1 %v3194_v11 }
 0x1bf   : > { %1580 = vmatpush.bf16.msra.mxu2 %v3198_v14  ;;  %1594 = vmatpush.bf16.msra.mxu3 %v3202_v2 }
 0x1c2   : > { %1553 = vmatpush.bf16.msra.mxu0 %v3142_v22  ;;  %1567 = vmatpush.bf16.msra.mxu1 %v3146_v23 }
 0x1c3   : > { %1581 = vmatpush.bf16.msra.mxu2 %v3150_v3  ;;  %1595 = vmatpush.bf16.msra.mxu3 %v3154_v24 }
 0x1c5   : > { %1554 = vmatmul.bf16.vlgmr.msra.gmra.mxu0 %v5112_v60  ;;  %1568 = vmatmul.bf16.vlgmr.msra.gmra.mxu1 %v5112_v60 }
 0x1c6   : > { %1582 = vmatmul.bf16.vlgmr.msra.gmra.mxu2 %v5112_v60  ;;  %1596 = vmatmul.bf16.vlgmr.msra.gmra.mxu3 %v5112_v60 }
 0x221   : > { %v1443_v25 = vpop.f32.mrf.mxu0  ;;  %v5182_v26 = vpop.f32.mrf.mxu1 }
 0x228   : > { %v5184_v27 = vpop.f32.mrf.mxu2  ;;  %v1485_v9 = vpop.f32.mrf.mxu3 }
 0x229   : > { %v1445_v28 = vpop.f32.mrf.mxu0  ;;  %v5186_v29 = vpop.f32.mrf.mxu1 }
 0x22a   : > { %v1771_v30 = vpack.c.bf16 %v5186_v29, %v5182_v26  ;;  %v1606_v39 = vpack.c.bf16 %v1445_v28, %v1443_v25  ;;  %v3863_v29 = vld [vmem:[%s4899_s23 + $0x10] sm:$0xff] }
 0x230   : > { %v5190_v31 = vpop.f32.mrf.mxu2  ;;  %v1487_v22 = vpop.f32.mrf.mxu3 }
 0x231   : > { %v1935_v32 = vpack.c.bf16 %v5190_v31, %v5184_v27  ;;  %v1499_v33 = vpop.f32.mrf.mxu0  ;;  %v1513_v34 = vpop.f32.mrf.mxu1  ;;  %v2099_v26 = vpack.c.bf16 %v1487_v22, %v1485_v9 }
 0x238   : > { %v5194_v35 = vpop.f32.mrf.mxu2 }
 0x239   : > { %v1501_v60 = vpop.f32.mrf.mxu0  ;;  %v1515_v36 = vpop.f32.mrf.mxu1 }
 0x23a   : > { %v1607_v37 = vpack.c.bf16 %v1501_v60, %v1499_v33  ;;  %v1772_v48 = vpack.c.bf16 %v1515_v36, %v1513_v34  ;;  %v1541_v36 = vpop.f32.mrf.mxu3 }
 0x23c   : > { %1616 = vmatpush.bf16.xpose.msrb.mxu0 %v1607_v37 }
 0x240   : > { %v5196_v38 = vpop.f32.mrf.mxu2 }
 0x241   : > { %v1936_v40 = vpack.c.bf16 %v5196_v38, %v5194_v35  ;;  %v3864_v35 = vld [vmem:[%s4899_s23 + $0x18] sm:$0xff]  ;;  %v3861_v38 = vld [vmem:[%s4899_s23] sm:$0xff] }
 0x242   : > { %v1555_v41 = vpop.f32.mrf.mxu0  ;;  %v1569_v42 = vpop.f32.mrf.mxu1 }
 0x243   : > { %1617 = vmatmul.bf16.vlgmr.msrb.gmra.mxu0 %v1606_v39  ;;  %v1543_v37 = vpop.f32.mrf.mxu3 }
 0x244   : > { %v2100_v39 = vpack.c.bf16 %v1543_v37, %v1541_v36 }
 0x249   : > { %v1583_v43 = vpop.f32.mrf.mxu2 }
 0x24a   : > { %v1557_v44 = vpop.f32.mrf.mxu0  ;;  %v1571_v45 = vpop.f32.mrf.mxu1 }
 0x24b   : > { %v1608_v46 = vpack.c.bf16 %v1557_v44, %v1555_v41  ;;  %v1773_v47 = vpack.c.bf16 %v1571_v45, %v1569_v42  ;;  %v3868_v41 = vld [vmem:[%s4899_s23 + $0x38] sm:$0xff]  ;;  %v3867_v42 = vld [vmem:[%s4899_s23 + $0x30] sm:$0xff]  ;;  %v3865_v44 = vld [vmem:[%s4899_s23 + $0x20] sm:$0xff] }
 0x24c   : > { %1755 = vmatpush.bf16.msrb.mxu2 %v3868_v41 }
 0x24d   : > { %1683 = vmatpush.bf16.msrb.mxu3 %v1608_v46  ;;  %1847 = vmatpush.bf16.msra.mxu0 %v1773_v47 }
 0x250   : > { %1756 = vmatpush.bf16.msrb.mxu2 %v3867_v42 }
 0x251   : > { %1781 = vmatpush.bf16.xpose.msra.mxu3 %v1772_v48  ;;  %v1585_v49 = vpop.f32.mrf.mxu2 }
 0x252   : > { %v1937_v50 = vpack.c.bf16 %v1585_v49, %v1583_v43  ;;  %v3866_v43 = vld [vmem:[%s4899_s23 + $0x28] sm:$0xff] }
 0x254   : > { %2011 = vmatpush.bf16.msrb.mxu0 %v1937_v50  ;;  %1757 = vmatpush.bf16.msrb.mxu2 %v3866_v43 }
 0x258   : > { %1758 = vmatpush.bf16.msrb.mxu2 %v3865_v44 }
 0x25c   : > { %1759 = vmatpush.bf16.msrb.mxu2 %v3864_v35 }
 0x260   : > { %1760 = vmatpush.bf16.msrb.mxu2 %v3863_v29 }
 0x2c0   : > { %v1618_v51 = vpop.f32.mrf.mxu0 }
 0x2c1   : > { %v1624_v52 = vsel %vm1623_vm7, %v1618_v51, -inf }
 0x2c2   : > { %1625 = vmax.xlane.f32.xlu2 %v1624_v52 }
 0x2c8   : > { %v1620_v53 = vpop.f32.mrf.mxu0 }
 0x2c9   : > { %v1627_v12 = vsel %vm1623_vm7, %v1620_v53, -inf }
 0x2ca   : > { %1628 = vmax.xlane.f32.xlu2 %v1627_v12 }
 0x335   : > { %v1626_v54 = vpop.xlane.xlu2 %1625 }
 0x336   : > { %v1630_v55 = vsub.f32 %v1618_v51, %v1626_v54 }
 0x338   : > { %v1632_v56 = vmul.f32 1.442695, %v1630_v55 }
 0x33a   : > { %4092 = vpow2.f32 %v1632_v56 }
 0x33d   : > { %v1629_v57 = vpop.xlane.xlu2 %1628 }
 0x33e   : > { %v1631_v58 = vsub.f32 %v1620_v53, %v1629_v57 }
 0x340   : > { %v4093_v59 = vpop.eup %4092  ;;  %v1634_v15 = vmul.f32 1.442695, %v1631_v58 }
 0x341   : > { %v1636_v61 = vsel %vm1623_vm7, %v4093_v59, 0.0 }
 0x342   : > { %4094 = vpow2.f32 %v1634_v15  ;;  %1637 = vadd.xlane.f32.xlu0 %v1636_v61 }
 0x348   : > { %v4095_v62 = vpop.eup %4094 }
 0x349   : > { %v1639_v63 = vsel %vm1623_vm7, %v4095_v62, 0.0 }
 0x34a   : > { %1640 = vadd.xlane.f32.xlu1 %v1639_v63 }
 0x3b5   : > { %v1638_v0 = vpop.xlane.xlu0 %1637 }
 0x3b6   : > { %4096 = vrcp.f32 %v1638_v0  ;;  %v1653_v14 = vand.u32 2147483648, %v1638_v0  ;;  %vm1647_vm9 = vweird.f32 %v1638_v0  ;;  %v1651_v2 = vand.u32 2147483647, %v1638_v0 }
 0x3b8   : > { %v1654_v21 = vor.u32 1.1754944e-38, %v1653_v14  ;;  %vm1652_vm12 = vcmp.eq.f32.partialorder %v1651_v2, 8.507059e+37 }
 0x3bc   : > { %v4097_v1 = vpop.eup %4096 }
 0x3bd   : > { %v1643_v6 = vmul.f32 %v4097_v1, %v1638_v0  ;;  %v1641_v7 = vpop.xlane.xlu1 %1640  ;;  %vm1648_vm8 = vweird.f32 %v4097_v1 }
 0x3be   : > { %4098 = vrcp.f32 %v1641_v7  ;;  %vm1649_vm10 = vmor %vm1647_vm9, %vm1648_vm8  ;;  %v1668_v17 = vand.u32 2147483648, %v1641_v7  ;;  %v1666_v20 = vand.u32 2147483647, %v1641_v7  ;;  %vm1662_vm13 = vweird.f32 %v1641_v7 }
 0x3bf   : > { %v1644_v8 = vsub.f32 1.0, %v1643_v6 }
 0x3c0   : > { %v1669_v24 = vor.u32 1.1754944e-38, %v1668_v17  ;;  %vm1667_vm15 = vcmp.eq.f32.partialorder %v1666_v20, 8.507059e+37 }
 0x3c1   : > { %v1645_v10 = vmul.f32 %v4097_v1, %v1644_v8 }
 0x3c3   : > { %v1646_v5 = vadd.f32 %v4097_v1, %v1645_v10 }
 0x3c4   : > { %v4099_v11 = vpop.eup %4098 }
 0x3c5   : > { %v1658_v13 = vmul.f32 %v4099_v11, %v1641_v7  ;;  %v1650_v18 = vsel %vm1649_vm10, %v4097_v1, %v1646_v5  ;;  %vm1663_vm11 = vweird.f32 %v4099_v11 }
 0x3c6   : > { %v1655_v3 = vsel %vm1652_vm12, %v1654_v21, %v1650_v18  ;;  %vm1664_vm14 = vmor %vm1662_vm13, %vm1663_vm11 }
 0x3c7   : > { %v1659_v16 = vsub.f32 1.0, %v1658_v13  ;;  %v1656_v33 = vmul.f32 %v4093_v59, %v1655_v3 }
 0x3c9   : > { %v1660_v19 = vmul.f32 %v4099_v11, %v1659_v16 }
 0x3cb   : > { %v1661_v23 = vadd.f32 %v4099_v11, %v1660_v19 }
 0x3cd   : > { %v1665_v25 = vsel %vm1664_vm14, %v4099_v11, %v1661_v23 }
 0x3ce   : > { %v1670_v28 = vsel %vm1667_vm15, %v1669_v24, %v1665_v25 }
 0x3cf   : > { %v1671_v34 = vmul.f32 %v4095_v62, %v1670_v28 }
 0x3d1   : > { %v1672_v60 = vpack.c.bf16 %v1671_v34, %v1656_v33 }
 0x3d3   : > { %3491 = vmatmul.msk.bf16.vlgmr.msrb.gmra.mxu3 %vm1623_vm7, %v1672_v60 }
 0x3d4   : > { %1945 = vmatpush.bf16.xpose.msrb.mxu3 %v1936_v40  ;;  %v5222_v40 = vpop.f32.mrf.mxu3 }
 0x3dc   : > { %v5224_v45 = vpop.f32.mrf.mxu3 }
 0x3e3   : > { %1782 = vmatmul.bf16.vlgmr.msra.gmra.mxu3 %v1771_v30  ;;  %v3862_v30 = vld [vmem:[%s4899_s23 + $0x8] sm:$0xff] }
 0x3e4   : > { %2109 = vmatpush.bf16.xpose.msra.mxu3 %v2100_v39  ;;  %1761 = vmatpush.bf16.msrb.mxu2 %v3862_v30 }
 0x3e8   : > { %1762 = vmatpush.bf16.msrb.mxu2 %v3861_v38 }
 0x3f3   : > { %1946 = vmatmul.bf16.vlgmr.msrb.gmra.mxu3 %v1935_v32 }
 0x403   : > { %2110 = vmatmul.bf16.vlgmr.msra.gmra.mxu3 %v2099_v26 }
 0x456   : > { %v1685_v46 = vpop.f32.mrf.mxu3 }
 0x45e   : > { %v1687_v47 = vpop.f32.mrf.mxu3 }
 0x45f   : > { %v1706_v48 = vpack.c.bf16 %v1687_v47, %v1685_v46 }
 0x461   : > { %1763 = vmatmul.bf16.vlgmr.msrb.gmra.mxu2 %v1706_v48 }
 0x466   : > { %v1783_v49 = vpop.f32.mrf.mxu3 }
 0x467   : > { %v1788_v27 = vsel %vm1623_vm7, %v1783_v49, -inf }
 0x468   : > { %1789 = vmax.xlane.f32.xlu2 %v1788_v27 }
 0x46e   : > { %v1785_v31 = vpop.f32.mrf.mxu3 }
 0x46f   : > { %v1791_v32 = vsel %vm1623_vm7, %v1785_v31, -inf }
 0x470   : > { %1792 = vmax.xlane.f32.xlu0 %v1791_v32 }
 0x476   : > { %v1947_v50 = vpop.f32.mrf.mxu3 }
 0x477   : > { %v1952_v51 = vsel %vm1623_vm7, %v1947_v50, -inf }
 0x478   : > { %1953 = vmax.xlane.f32.xlu1 %v1952_v51 }
 0x47e   : > { %v1949_v52 = vpop.f32.mrf.mxu3 }
 0x47f   : > { %v1955_v53 = vsel %vm1623_vm7, %v1949_v52, -inf }
 0x480   : > { %1956 = vmax.xlane.f32.xlu2 %v1955_v53 }
 0x486   : > { %v2111_v12 = vpop.f32.mrf.mxu3 }
 0x487   : > { %v2116_v54 = vsel %vm1623_vm7, %v2111_v12, -inf }
 0x488   : > { %2117 = vmax.xlane.f32.xlu0 %v2116_v54 }
 0x48e   : > { %v2113_v55 = vpop.f32.mrf.mxu3 }
 0x48f   : > { %v2119_v56 = vsel %vm1623_vm7, %v2113_v55, -inf }
 0x490   : > { %2120 = vmax.xlane.f32.xlu1 %v2119_v56 }
 0x4db   : > { %v1790_v57 = vpop.xlane.xlu2 %1789 }
 0x4dc   : > { %v1794_v58 = vsub.f32 %v1783_v49, %v1790_v57  ;;  %v2101_v57 = vpack.c.bf16 %v5224_v45, %v5222_v40 }
 0x4de   : > { %v1796_v59 = vmul.f32 1.442695, %v1794_v58  ;;  %v3876_v58 = vld [vmem:[%s4899_s23 + $0x78] sm:$0xff] }
 0x4df   : > { %1919 = vmatpush.bf16.msrb.mxu1 %v3876_v58  ;;  %v3889_v58 = vld [vmem:[%s4899_s23 + $0xe0] sm:$0xff] }
 0x4e0   : > { %4100 = vpow2.f32 %v1796_v59 }
 0x4e3   : > { %v1793_v15 = vpop.xlane.xlu0 %1792 }
 0x4e4   : > { %v1795_v61 = vsub.f32 %v1785_v31, %v1793_v15  ;;  %v3884_v15 = vld [vmem:[%s4899_s23 + $0xb8] sm:$0xff] }
 0x4e5   : > { %2083 = vmatpush.bf16.msra.mxu2 %v3884_v15 }
 0x4e6   : > { %v5232_v62 = vpop.eup %4100  ;;  %v1798_v63 = vmul.f32 1.442695, %v1795_v61 }
 0x4e7   : > { %v1800_v0 = vsel %vm1623_vm7, %v5232_v62, 0.0 }
 0x4e8   : > { %4102 = vpow2.f32 %v1798_v63  ;;  %1801 = vadd.xlane.f32.xlu2 %v1800_v0 }
 0x4eb   : > { %v1954_v1 = vpop.xlane.xlu1 %1953 }
 0x4ec   : > { %v1958_v6 = vsub.f32 %v1947_v50, %v1954_v1 }
 0x4ee   : > { %v5236_v7 = vpop.eup %4102  ;;  %v1960_v8 = vmul.f32 1.442695, %v1958_v6 }
 0x4ef   : > { %v1803_v9 = vsel %vm1623_vm7, %v5236_v7, 0.0 }
 0x4f0   : > { %4104 = vpow2.f32 %v1960_v8  ;;  %1804 = vadd.xlane.f32.xlu0 %v1803_v9 }
 0x4f3   : > { %v1957_v10 = vpop.xlane.xlu2 %1956 }
 0x4f4   : > { %v1959_v11 = vsub.f32 %v1949_v52, %v1957_v10  ;;  %v3874_v10 = vld [vmem:[%s4899_s23 + $0x68] sm:$0xff] }
 0x4f6   : > { %v5240_v5 = vpop.eup %4104  ;;  %v1962_v13 = vmul.f32 1.442695, %v1959_v11 }
 0x4f7   : > { %v1964_v14 = vsel %vm1623_vm7, %v5240_v5, 0.0 }
 0x4f8   : > { %4106 = vpow2.f32 %v1962_v13  ;;  %1965 = vadd.xlane.f32.xlu1 %v1964_v14 }
 0x4fb   : > { %v2118_v2 = vpop.xlane.xlu0 %2117 }
 0x4fc   : > { %v2122_v16 = vsub.f32 %v2111_v12, %v2118_v2 }
 0x4fe   : > { %v5244_v17 = vpop.eup %4106  ;;  %v2124_v18 = vmul.f32 1.442695, %v2122_v16 }
 0x4ff   : > { %v1967_v19 = vsel %vm1623_vm7, %v5244_v17, 0.0 }
 0x500   : > { %4108 = vpow2.f32 %v2124_v18  ;;  %1968 = vadd.xlane.f32.xlu2 %v1967_v19 }
 0x503   : > { %v2121_v20 = vpop.xlane.xlu1 %2120 }
 0x504   : > { %v2123_v21 = vsub.f32 %v2113_v55, %v2121_v20 }
 0x506   : > { %v5248_v22 = vpop.eup %4108  ;;  %v2126_v23 = vmul.f32 1.442695, %v2123_v21  ;;  %v3873_v21 = vld [vmem:[%s4899_s23 + $0x60] sm:$0xff] }
 0x507   : > { %v2128_v3 = vsel %vm1623_vm7, %v5248_v22, 0.0 }
 0x508   : > { %4110 = vpow2.f32 %v2126_v23  ;;  %2129 = vadd.xlane.f32.xlu0 %v2128_v3 }
 0x50e   : > { %v5252_v24 = vpop.eup %4110 }
 0x50f   : > { %v2131_v25 = vsel %vm1623_vm7, %v5252_v24, 0.0 }
 0x510   : > { %2132 = vadd.xlane.f32.xlu1 %v2131_v25 }
 0x55b   : > { %v1802_v28 = vpop.xlane.xlu2 %1801 }
 0x55c   : > { %4112 = vrcp.f32 %v1802_v28  ;;  %v1817_v44 = vand.u32 2147483648, %v1802_v28  ;;  %vm1811_vm1 = vweird.f32 %v1802_v28  ;;  %v1815_v35 = vand.u32 2147483647, %v1802_v28 }
 0x55e   : > { %v1818_v47 = vor.u32 1.1754944e-38, %v1817_v44  ;;  %vm1816_vm4 = vcmp.eq.f32.partialorder %v1815_v35, 8.507059e+37 }
 0x562   : > { %v4113_v33 = vpop.eup %4112 }
 0x563   : > { %v1807_v34 = vmul.f32 %v4113_v33, %v1802_v28  ;;  %v1805_v60 = vpop.xlane.xlu0 %1804  ;;  %vm1812_vm0 = vweird.f32 %v4113_v33 }
 0x564   : > { %4114 = vrcp.f32 %v1805_v60  ;;  %vm1813_vm2 = vmor %vm1811_vm1, %vm1812_vm0  ;;  %v1832_v29 = vand.u32 2147483648, %v1805_v60  ;;  %v1830_v46 = vand.u32 2147483647, %v1805_v60  ;;  %vm1826_vm5 = vweird.f32 %v1805_v60 }
 0x565   : > { %v1808_v36 = vsub.f32 1.0, %v1807_v34 }
 0x566   : > { %v1833_v31 = vor.u32 1.1754944e-38, %v1832_v29  ;;  %vm1831_vm8 = vcmp.eq.f32.partialorder %v1830_v46, 8.507059e+37 }
 0x567   : > { %v1809_v37 = vmul.f32 %v4113_v33, %v1808_v36 }
 0x569   : > { %v1810_v41 = vadd.f32 %v4113_v33, %v1809_v37 }
 0x56a   : > { %v4115_v39 = vpop.eup %4114 }
 0x56b   : > { %v1822_v42 = vmul.f32 %v4115_v39, %v1805_v60  ;;  %v1966_v43 = vpop.xlane.xlu1 %1965  ;;  %v1814_v30 = vsel %vm1813_vm2, %v4113_v33, %v1810_v41  ;;  %vm1827_vm3 = vweird.f32 %v4115_v39  ;;  %v3872_v60 = vld [vmem:[%s4899_s23 + $0x58] sm:$0xff] }
 0x56c   : > { %4116 = vrcp.f32 %v1966_v43  ;;  %v1819_v27 = vsel %vm1816_vm4, %v1818_v47, %v1814_v30  ;;  %vm1828_vm6 = vmor %vm1826_vm5, %vm1827_vm3  ;;  %v1981_v1 = vand.u32 2147483648, %v1966_v43  ;;  %vm1975_vm10 = vweird.f32 %v1966_v43 }
 0x56d   : > { %v1823_v26 = vsub.f32 1.0, %v1822_v42  ;;  %v1820_v53 = vmul.f32 %v5232_v62, %v1819_v27  ;;  %v3875_v62 = vld [vmem:[%s4899_s23 + $0x70] sm:$0xff]  ;;  %v1979_v6 = vand.u32 2147483647, %v1966_v43 }
 0x56e   : > { %1920 = vmatpush.bf16.msrb.mxu1 %v3875_v62  ;;  %v1982_v11 = vor.u32 1.1754944e-38, %v1981_v1  ;;  %v3885_v62 = vld [vmem:[%s4899_s23 + $0xc0] sm:$0xff] }
 0x56f   : > { %v1824_v38 = vmul.f32 %v4115_v39, %v1823_v26  ;;  %vm1980_vm13 = vcmp.eq.f32.partialorder %v1979_v6, 8.507059e+37 }
 0x571   : > { %v1825_v48 = vadd.f32 %v4115_v39, %v1824_v38 }
 0x572   : > { %v4117_v49 = vpop.eup %4116  ;;  %1921 = vmatpush.bf16.msrb.mxu1 %v3874_v10  ;;  %v1764_v10 = vpop.f32.mrf.mxu2 }
 0x573   : > { %v1829_v32 = vsel %vm1828_vm6, %v4115_v39, %v1825_v48  ;;  %v1971_v50 = vmul.f32 %v4117_v49, %v1966_v43  ;;  %v1969_v51 = vpop.xlane.xlu2 %1968  ;;  %vm1976_vm9 = vweird.f32 %v4117_v49 }
 0x574   : > { %v1834_v52 = vsel %vm1831_vm8, %v1833_v31, %v1829_v32  ;;  %4118 = vrcp.f32 %v1969_v51  ;;  %vm1977_vm11 = vmor %vm1975_vm10, %vm1976_vm9  ;;  %v1996_v40 = vand.u32 2147483648, %v1969_v51  ;;  %v1994_v9 = vand.u32 2147483647, %v1969_v51  ;;  %v3871_v31 = vld [vmem:[%s4899_s23 + $0x50] sm:$0xff] }
 0x575   : > { %v1835_v12 = vmul.f32 %v5236_v7, %v1834_v52  ;;  %v1972_v54 = vsub.f32 1.0, %v1971_v50  ;;  %vm1990_vm14 = vweird.f32 %v1969_v51  ;;  %v3883_v32 = vld [vmem:[%s4899_s23 + $0xb0] sm:$0xff]  ;;  %v3870_v50 = vld [vmem:[%s4899_s23 + $0x48] sm:$0xff]  ;;  %v3881_v52 = vld [vmem:[%s4899_s23 + $0xa0] sm:$0xff] }
 0x576   : > { %v1997_v16 = vor.u32 1.1754944e-38, %v1996_v40  ;;  %vm1995_vm0 = vcmp.eq.f32.partialorder %v1994_v9, 8.507059e+37  ;;  %1922 = vmatpush.bf16.msrb.mxu1 %v3873_v21  ;;  %2084 = vmatpush.bf16.msra.mxu2 %v3883_v32  ;;  %v3905_v32 = vld [vmem:[%s4908_s26 + $0x64] sm:$0xf] }
 0x577   : > { %v1973_v55 = vmul.f32 %v4117_v49, %v1972_v54  ;;  %v1836_v56 = vpack.c.bf16 %v1835_v12, %v1820_v53  ;;  %v3892_v53 = vld [vmem:[%s4899_s23 + $0xf8] sm:$0xff]  ;;  %v3879_v12 = vld [vmem:[%s4899_s23 + $0x90] sm:$0xff] }
 0x578   : > { %v3891_v54 = vld [vmem:[%s4899_s23 + $0xf0] sm:$0xff] }
 0x579   : > { %3524 = vmatmul.msk.bf16.vlgmr.msra.gmra.mxu0 %vm1623_vm7, %v1836_v56  ;;  %v1974_v61 = vadd.f32 %v4117_v49, %v1973_v55  ;;  %v3878_v55 = vld [vmem:[%s4899_s23 + $0x88] sm:$0xff] }
 0x57a   : > { %v4119_v59 = vpop.eup %4118  ;;  %2175 = vmatpush.bf16.msra.mxu0 %v2101_v57  ;;  %1923 = vmatpush.bf16.msrb.mxu1 %v3872_v60  ;;  %v3890_v56 = vld [vmem:[%s4899_s23 + $0xe8] sm:$0xff]  ;;  %v3877_v57 = vld [vmem:[%s4899_s23 + $0x80] sm:$0xff] }
 0x57b   : > { %v1986_v63 = vmul.f32 %v4119_v59, %v1969_v51  ;;  %v2130_v0 = vpop.xlane.xlu0 %2129  ;;  %v1978_v45 = vsel %vm1977_vm11, %v4117_v49, %v1974_v61  ;;  %vm1991_vm12 = vweird.f32 %v4119_v59  ;;  %v3882_v51 = vld [vmem:[%s4899_s23 + $0xa8] sm:$0xff]  ;;  %v3887_v61 = vld [vmem:[%s4899_s23 + $0xd0] sm:$0xff] }
 0x57c   : > { %4120 = vrcp.f32 %v2130_v0  ;;  %v1983_v2 = vsel %vm1980_vm13, %v1982_v11, %v1978_v45  ;;  %vm1992_vm15 = vmor %vm1990_vm14, %vm1991_vm12  ;;  %v2145_v41 = vand.u32 2147483648, %v2130_v0  ;;  %vm2139_vm2 = vweird.f32 %v2130_v0  ;;  %2085 = vmatpush.bf16.msra.mxu2 %v3882_v51  ;;  %v3675_v51 = vld [vmem:[%s4908_s26 + $0x68] sm:$0xf0] }
 0x57d   : > { %v1987_v7 = vsub.f32 1.0, %v1986_v63  ;;  %v1984_v3 = vmul.f32 %v5240_v5, %v1983_v2  ;;  %v2143_v42 = vand.u32 2147483647, %v2130_v0  ;;  %v3886_v63 = vld [vmem:[%s4899_s23 + $0xc8] sm:$0xff] }
 0x57e   : > { %v2146_v26 = vor.u32 1.1754944e-38, %v2145_v41  ;;  %1924 = vmatpush.bf16.msrb.mxu1 %v3871_v31  ;;  %v3906_v31 = vld [vmem:[%s4908_s26 + $0x64] sm:$0xf0] }
 0x57f   : > { %v1988_v8 = vmul.f32 %v4119_v59, %v1987_v7  ;;  %vm2144_vm5 = vcmp.eq.f32.partialorder %v2143_v42, 8.507059e+37 }
 0x580   : > { %2086 = vmatpush.bf16.msra.mxu2 %v3881_v52  ;;  %v3665_v52 = vld [vmem:[%s4908_s26 + $0x50] sm:$0xf] }
 0x581   : > { %v1989_v13 = vadd.f32 %v4119_v59, %v1988_v8 }
 0x582   : > { %v4121_v14 = vpop.eup %4120  ;;  %1925 = vmatpush.bf16.msrb.mxu1 %v3870_v50 }
 0x583   : > { %v1993_v18 = vsel %vm1992_vm15, %v4119_v59, %v1989_v13  ;;  %v2135_v19 = vmul.f32 %v4121_v14, %v2130_v0  ;;  %v2133_v20 = vpop.xlane.xlu1 %2132  ;;  %vm2140_vm1 = vweird.f32 %v4121_v14  ;;  %v3888_v59 = vld [vmem:[%s4899_s23 + $0xd8] sm:$0xff]  ;;  %v1766_v13 = vpop.f32.mrf.mxu2 }
 0x584   : > { %v1998_v23 = vsel %vm1995_vm0, %v1997_v16, %v1993_v18  ;;  %4122 = vrcp.f32 %v2133_v20  ;;  %vm2141_vm3 = vmor %vm2139_vm2, %vm2140_vm1  ;;  %v2160_v5 = vand.u32 2147483648, %v2133_v20  ;;  %v2158_v35 = vand.u32 2147483647, %v2133_v20 }
 0x585   : > { %v1999_v25 = vmul.f32 %v5244_v17, %v1998_v23  ;;  %v2136_v28 = vsub.f32 1.0, %v2135_v19  ;;  %vm2154_vm6 = vweird.f32 %v2133_v20 }
 0x586   : > { %v2161_v38 = vor.u32 1.1754944e-38, %v2160_v5  ;;  %vm2159_vm9 = vcmp.eq.f32.partialorder %v2158_v35, 8.507059e+37 }
 0x587   : > { %v2137_v33 = vmul.f32 %v4121_v14, %v2136_v28  ;;  %v2000_v34 = vpack.c.bf16 %v1999_v25, %v1984_v3  ;;  %v4136_v25 = vld [vmem:[#allocation2] sm:$0xff] }
 0x589   : > { %3557 = vmatmul.msk.bf16.vlgmr.msrb.gmra.mxu0 %vm1623_vm7, %v2000_v34  ;;  %v2138_v37 = vadd.f32 %v4121_v14, %v2137_v33 }
 0x58a   : > { %v4123_v36 = vpop.eup %4122 }
 0x58b   : > { %v2150_v39 = vmul.f32 %v4123_v36, %v2133_v20  ;;  %v2142_v44 = vsel %vm2141_vm3, %v4121_v14, %v2138_v37  ;;  %vm2155_vm4 = vweird.f32 %v4123_v36  ;;  %v4082_v14 = vld [vmem:[%s779_s28] ss:$0 sm:$0xff] }
 0x58c   : > { %v2147_v30 = vsel %vm2144_vm5, %v2146_v26, %v2142_v44  ;;  %vm2156_vm8 = vmor %vm2154_vm6, %vm2155_vm4  ;;  %v1769_v18 = vadd.f32 %v4082_v14, %v1764_v10  ;;  %v1770_v3 = vadd.f32 %v4082_v14, %v1766_v13  ;;  %v3643_v10 = vld [vmem:[%s4908_s26 + $0x28] sm:$0xf0]  ;;  %v3633_v13 = vld [vmem:[%s4908_s26 + $0x10] sm:$0xf] }
 0x58d   : > { %v2151_v43 = vsub.f32 1.0, %v2150_v39  ;;  %v2148_v48 = vmul.f32 %v5248_v22, %v2147_v30  ;;  %v3869_v22 = vld [vmem:[%s4899_s23 + $0x40] sm:$0xff]  ;;  %v4137_v39 = vld [vmem:[#allocation2 + $0x8] sm:$0xff]  ;;  %v3896_v14 = vld [vmem:[%s4908_s26 + $0x14] sm:$0xf0] }
 0x58e   : > { %1926 = vmatpush.bf16.msrb.mxu1 %v3869_v22  ;;  %v3681_v30 = vld [vmem:[%s4908_s26 + $0x70] sm:$0xf]  ;;  %v3678_v22 = vor.u32 %v3905_v32, %v3675_v51 }
 0x58f   : > { %v2152_v17 = vmul.f32 %v4123_v36, %v2151_v43 }
 0x591   : > { %v2153_v29 = vadd.f32 %v4123_v36, %v2152_v17 }
 0x592   : > { %2247 = vmatpush.bf16.msra.mxu1 %v3892_v53  ;;  %v3903_v53 = vld [vmem:[%s4908_s26 + $0x54] sm:$0xf] }
 0x593   : > { %v2157_v46 = vsel %vm2156_vm8, %v4123_v36, %v2153_v29 }
 0x594   : > { %v2162_v47 = vsel %vm2159_vm9, %v2161_v38, %v2157_v46  ;;  %v3908_v38 = vld [vmem:[%s4908_s26 + $0x74] sm:$0xf0]  ;;  %v3907_v46 = vld [vmem:[%s4908_s26 + $0x74] sm:$0xf] }
 0x595   : > { %v2163_v49 = vmul.f32 %v5252_v24, %v2162_v47  ;;  %v3880_v24 = vld [vmem:[%s4899_s23 + $0x98] sm:$0xff]  ;;  %v3682_v47 = vor.u32 %v3908_v38, %v3681_v30  ;;  %s5632_s23 = scalar_lea.vmem [#allocation12], %s4883_s15 }
 0x596   : > { %2087 = vmatpush.bf16.msra.mxu2 %v3880_v24  ;;  %2248 = vmatpush.bf16.msra.mxu1 %v3891_v54  ;;  %v3904_v24 = vld [vmem:[%s4908_s26 + $0x54] sm:$0xf0]  ;;  %v3667_v54 = vld [vmem:[%s4908_s26 + $0x58] sm:$0xf0] }
 0x597   : > { %v2164_v27 = vpack.c.bf16 %v2163_v49, %v2148_v48  ;;  %v3683_v48 = vld [vmem:[%s4908_s26 + $0x78] sm:$0xf0]  ;;  %2420 = vmatpush.bf16.msrb.mxu3 %v3682_v47 }
 0x598   : > { %v3686_v49 = vor.u32 %v3907_v46, %v3683_v48 }
 0x599   : > { %3590 = vmatmul.msk.bf16.vlgmr.msra.gmra.mxu0 %vm1623_vm7, %v2164_v27  ;;  %v3673_v27 = vld [vmem:[%s4908_s26 + $0x60] sm:$0xf] }
 0x59a   : > { %2088 = vmatpush.bf16.msra.mxu2 %v3879_v12  ;;  %2249 = vmatpush.bf16.msra.mxu1 %v3890_v56  ;;  %v3674_v50 = vor.u32 %v3906_v31, %v3673_v27  ;;  %v3666_v12 = vor.u32 %v3904_v24, %v3665_v52  ;;  %v3657_v56 = vld [vmem:[%s4908_s26 + $0x40] sm:$0xf]  ;;  %v4083_v31 = vld [vmem:[%s5632_s23] ss:$0 sm:$0xff] }
 0x59b   : > { %2434 = vmatpush.bf16.msrb.mxu0 %v3686_v49 }
 0x59c   : > { %2421 = vmatpush.bf16.msrb.mxu3 %v3674_v50 }
 0x59e   : > { %2089 = vmatpush.bf16.msra.mxu2 %v3878_v55  ;;  %2250 = vmatpush.bf16.msra.mxu1 %v3889_v58  ;;  %v3670_v55 = vor.u32 %v3903_v53, %v3667_v54  ;;  %v3901_v58 = vld [vmem:[%s4908_s26 + $0x44] sm:$0xf] }
 0x59f   : > { %2435 = vmatpush.bf16.msrb.mxu0 %v3678_v22 }
 0x5a0   : > { %2422 = vmatpush.bf16.msrb.mxu3 %v3666_v12 }
 0x5a2   : > { %2090 = vmatpush.bf16.msra.mxu2 %v3877_v57  ;;  %2251 = vmatpush.bf16.msra.mxu1 %v3888_v59  ;;  %v3902_v57 = vld [vmem:[%s4908_s26 + $0x44] sm:$0xf0] }
 0x5a3   : > { %2436 = vmatpush.bf16.msrb.mxu0 %v3670_v55  ;;  %v3658_v59 = vor.u32 %v3902_v57, %v3657_v56  ;;  %v2334_v55 = vld [vmem:[%s4926_s8] sm:$0x3] }
 0x5a5   : > { %2423 = vmatpush.bf16.msrb.mxu3 %v3658_v59 }
 0x5a6   : > { %2252 = vmatpush.bf16.msra.mxu1 %v3887_v61 }
 0x5aa   : > { %2253 = vmatpush.bf16.msra.mxu1 %v3886_v63  ;;  %v3649_v63 = vld [vmem:[%s4908_s26 + $0x30] sm:$0xf] }
 0x5ae   : > { %2254 = vmatpush.bf16.msra.mxu1 %v3885_v62  ;;  %v3899_v62 = vld [vmem:[%s4908_s26 + $0x34] sm:$0xf] }
 0x5f6   : > { %v1849_v15 = vpop.f32.mrf.mxu0 }
 0x5fe   : > { %v1851_v0 = vpop.f32.mrf.mxu0 }
 0x5ff   : > { %v1870_v1 = vpack.c.bf16 %v1851_v0, %v1849_v15  ;;  %v3659_v15 = vld [vmem:[%s4908_s26 + $0x48] sm:$0xf0]  ;;  %v3900_v0 = vld [vmem:[%s4908_s26 + $0x34] sm:$0xf0] }
 0x600   : > { %v3662_v61 = vor.u32 %v3901_v58, %v3659_v15 }
 0x601   : > { %1927 = vmatmul.bf16.vlgmr.msrb.gmra.mxu1 %v1870_v1  ;;  %v3650_v1 = vor.u32 %v3900_v0, %v3649_v63  ;;  %v3924_v0 = vld [vmem:[%s4932_s19 + $0x78] sm:$0xff] }
 0x602   : > { %2437 = vmatpush.bf16.msrb.mxu0 %v3662_v61  ;;  %2772 = vmatpush.bf16.msrb.mxu1 %v3924_v0 }
 0x603   : > { %2424 = vmatpush.bf16.msrb.mxu3 %v3650_v1 }
 0x606   : > { %v2013_v6 = vpop.f32.mrf.mxu0 }
 0x60e   : > { %v2015_v7 = vpop.f32.mrf.mxu0 }
 0x60f   : > { %v2034_v40 = vpack.c.bf16 %v2015_v7, %v2013_v6  ;;  %v3651_v6 = vld [vmem:[%s4908_s26 + $0x38] sm:$0xf0] }
 0x610   : > { %v3654_v7 = vor.u32 %v3899_v62, %v3651_v6 }
 0x611   : > { %2091 = vmatmul.bf16.vlgmr.msra.gmra.mxu2 %v2034_v40  ;;  %v3641_v40 = vld [vmem:[%s4908_s26 + $0x20] sm:$0xf] }
 0x612   : > { %2438 = vmatpush.bf16.msrb.mxu0 %v3654_v7 }
 0x616   : > { %v2177_v45 = vpop.f32.mrf.mxu0 }
 0x61e   : > { %v2179_v8 = vpop.f32.mrf.mxu0 }
 0x61f   : > { %v2198_v9 = vpack.c.bf16 %v2179_v8, %v2177_v45  ;;  %v3898_v45 = vld [vmem:[%s4908_s26 + $0x24] sm:$0xf0]  ;;  %v3897_v8 = vld [vmem:[%s4908_s26 + $0x24] sm:$0xf] }
 0x621   : > { %2255 = vmatmul.bf16.vlgmr.msra.gmra.mxu1 %v2198_v9  ;;  %v3642_v9 = vor.u32 %v3898_v45, %v3641_v40 }
 0x623   : > { %2425 = vmatpush.bf16.msrb.mxu3 %v3642_v9 }
 0x67e   : > { %v1928_v11 = vpop.f32.mrf.mxu1 }
 0x67f   : > { %v1933_v19 = vadd.f32 %v1928_v11, %v1769_v18  ;;  %v3646_v11 = vor.u32 %v3897_v8, %v3643_v10  ;;  %v3634_v18 = vor.u32 %v3896_v14, %v3633_v13  ;;  %v3923_v8 = vld [vmem:[%s4932_s19 + $0x70] sm:$0xff]  ;;  %v3916_v14 = vld [vmem:[%s4932_s19 + $0x38] sm:$0xff] }
 0x680   : > { %2773 = vmatpush.bf16.msrb.mxu1 %v3923_v8  ;;  %2758 = vmatpush.bf16.msrb.mxu2 %v3916_v14  ;;  %v3912_v8 = vld [vmem:[%s4932_s19 + $0x18] sm:$0xff]  ;;  %v3918_v14 = vld [vmem:[%s4932_s19 + $0x48] sm:$0xff] }
 0x681   : > { %2439 = vmatpush.bf16.msrb.mxu0 %v3646_v11  ;;  %2426 = vmatpush.bf16.msrb.mxu3 %v3634_v18 }
 0x686   : > { %v1930_v2 = vpop.f32.mrf.mxu1 }
 0x687   : > { %v1934_v34 = vadd.f32 %v1930_v2, %v1770_v3  ;;  %v3895_v2 = vld [vmem:[%s4908_s26 + $0x14] sm:$0xf] }
 0x694   : > { %v2092_v16 = vpop.f32.mrf.mxu2 }
 0x695   : > { %v2097_v20 = vadd.f32 %v2092_v16, %v1933_v19  ;;  %v3635_v19 = vld [vmem:[%s4908_s26 + $0x18] sm:$0xf0] }
 0x696   : > { %v3638_v3 = vor.u32 %v3895_v2, %v3635_v19 }
 0x698   : > { %2440 = vmatpush.bf16.msrb.mxu0 %v3638_v3 }
 0x69c   : > { %v2094_v33 = vpop.f32.mrf.mxu2 }
 0x69d   : > { %v2098_v60 = vadd.f32 %v2094_v33, %v1934_v34  ;;  %v3627_v33 = vld [vmem:[%s4908_s26 + $0x8] sm:$0xf0] }
 0x69e   : > { %v2256_v21 = vpop.f32.mrf.mxu1 }
 0x69f   : > { %v2261_v23 = vadd.f32 %v2256_v21, %v2097_v20  ;;  %v3625_v20 = vld [vmem:[%s4908_s26] sm:$0xf]  ;;  %v3894_v21 = vld [vmem:[%s4908_s26 + $0x4] sm:$0xf0] }
 0x6a0   : > { %v3626_v34 = vor.u32 %v3894_v21, %v3625_v20  ;;  %v3922_v21 = vld [vmem:[%s4932_s19 + $0x68] sm:$0xff] }
 0x6a1   : > { %v5296_v28 = vadd.f32 %v4136_v25, %v2261_v23  ;;  %v3893_v25 = vld [vmem:[%s4908_s26 + $0x4] sm:$0xf]  ;;  %s5633_s26 = scalar_lea.vmem [#allocation14], %s4883_s15  ;;  %2774 = vmatpush.bf16.msrb.mxu1 %v3922_v21 }
 0x6a2   : > { %2427 = vmatpush.bf16.msrb.mxu3 %v3626_v34  ;;  %v4084_v52 = vld [vmem:[%s5633_s26] ss:$0 sm:$0xff] }
 0x6a3   : > { %2267 = vadd.xlane.f32.xlu2 %v5296_v28 }
 0x6a6   : > { %v2258_v36 = vpop.f32.mrf.mxu1 }
 0x6a7   : > { %v2262_v37 = vadd.f32 %v2258_v36, %v2098_v60  ;;  %v3630_v36 = vor.u32 %v3893_v25, %v3627_v33 }
 0x6a9   : > { %v5299_v41 = vadd.f32 %v4137_v39, %v2262_v37  ;;  %2441 = vmatpush.bf16.msrb.mxu0 %v3630_v36 }
 0x6ab   : > { %2269 = vadd.xlane.f32.xlu0 %v5299_v41 }
 0x716   : > { %v2268_v42 = vpop.xlane.xlu2 %2267 }
 0x717   : > { %v2271_v43 = vmul.f32 %v2268_v42, %v4994_v4 }
 0x719   : > { %v5304_v5 = vsub.f32 %v5296_v28, %v2271_v43 }
 0x71b   : > { %v2275_v44 = vmul.f32 %v5304_v5, %v5304_v5 }
 0x71d   : > { %2277 = vadd.xlane.f32.xlu1 %v2275_v44 }
 0x71e   : > { %v2270_v17 = vpop.xlane.xlu0 %2269 }
 0x71f   : > { %v2272_v35 = vmul.f32 %v2270_v17, %v4994_v4 }
 0x721   : > { %v5310_v26 = vsub.f32 %v5299_v41, %v2272_v35 }
 0x723   : > { %v2276_v29 = vmul.f32 %v5310_v26, %v5310_v26 }
 0x725   : > { %2279 = vadd.xlane.f32.xlu2 %v2276_v29 }
 0x790   : > { %v2278_v16 = vpop.xlane.xlu1 %2277 }
 0x791   : > { %v2281_v23 = vmul.f32 %v2278_v16, %v4994_v4 }
 0x793   : > { %v2283_v60 = vadd.f32 1e-05, %v2281_v23 }
 0x795   : > { %4124 = vrsqrt.f32 %v2283_v60  ;;  %vm2291_vm10 = vweird.f32 %v2283_v60 }
 0x798   : > { %v2280_v37 = vpop.xlane.xlu2 %2279 }
 0x799   : > { %v2282_v39 = vmul.f32 %v2280_v37, %v4994_v4 }
 0x79b   : > { %v4125_v42 = vpop.eup %4124  ;;  %v2284_v43 = vadd.f32 1e-05, %v2282_v39 }
 0x79c   : > { %v2286_v44 = vmul.f32 %v4125_v42, %v2283_v60  ;;  %vm2292_vm7 = vweird.f32 %v4125_v42  ;;  %v3915_v60 = vld [vmem:[%s4932_s19 + $0x30] sm:$0xff] }
 0x79d   : > { %4126 = vrsqrt.f32 %v2284_v43  ;;  %vm2293_vm11 = vmor %vm2291_vm10, %vm2292_vm7  ;;  %vm2301_vm13 = vweird.f32 %v2284_v43  ;;  %2759 = vmatpush.bf16.msrb.mxu2 %v3915_v60 }
 0x79e   : > { %v2287_v17 = vmul.f32 %v4125_v42, %v2286_v44 }
 0x7a0   : > { %v2288_v35 = vmul.f32 0.5, %v2287_v17 }
 0x7a2   : > { %v2289_v29 = vsub.f32 1.5, %v2288_v35 }
 0x7a3   : > { %v4127_v30 = vpop.eup %4126 }
 0x7a4   : > { %v2290_v38 = vmul.f32 %v4125_v42, %v2289_v29  ;;  %v2296_v46 = vmul.f32 %v4127_v30, %v2284_v43  ;;  %vm2302_vm12 = vweird.f32 %v4127_v30  ;;  %v3921_v29 = vld [vmem:[%s4932_s19 + $0x60] sm:$0xff] }
 0x7a5   : > { %vm2303_vm14 = vmor %vm2301_vm13, %vm2302_vm12  ;;  %2775 = vmatpush.bf16.msrb.mxu1 %v3921_v29 }
 0x7a6   : > { %v2297_v47 = vmul.f32 %v4127_v30, %v2296_v46  ;;  %v2294_v48 = vsel %vm2293_vm11, %v4125_v42, %v2290_v38 }
 0x7a7   : > { %v2305_v4 = vmul.f32 %v2294_v48, %v5304_v5  ;;  %v2337_v5 = vperm.slane %v2334_v55, 1  ;;  %v3914_v48 = vld [vmem:[%s4932_s19 + $0x28] sm:$0xff] }
 0x7a8   : > { %v2298_v49 = vmul.f32 0.5, %v2297_v47  ;;  %2760 = vmatpush.bf16.msrb.mxu2 %v3914_v48 }
 0x7a9   : > { %v2310_v22 = vmul.f32 %v4083_v31, %v2305_v4 }
 0x7aa   : > { %v2299_v27 = vsub.f32 1.5, %v2298_v49 }
 0x7ab   : > { %v2315_v53 = vadd.f32 %v4084_v52, %v2310_v22  ;;  %v3920_v22 = vld [vmem:[%s4932_s19 + $0x58] sm:$0xff] }
 0x7ac   : > { %v2300_v32 = vmul.f32 %v4127_v30, %v2299_v27  ;;  %2776 = vmatpush.bf16.msrb.mxu1 %v3920_v22  ;;  %v3909_v22 = vld [vmem:[%s4932_s19] sm:$0xff] }
 0x7ae   : > { %v2304_v50 = vsel %vm2303_vm14, %v4127_v30, %v2300_v32 }
 0x7af   : > { %v2306_v51 = vmul.f32 %v2304_v50, %v5310_v26  ;;  %v2336_v26 = vperm.slane %v2334_v55, 0 }
 0x7b1   : > { %v2311_v24 = vmul.f32 %v4083_v31, %v2306_v51 }
 0x7b3   : > { %v2316_v12 = vadd.f32 %v4084_v52, %v2311_v24 }
 0x7b5   : > { %v2317_v54 = vpack.c.bf16 %v2316_v12, %v2315_v53 }
 0x7b7   : > { %2428 = vmatmul.bf16.vlgmr.msrb.gmra.mxu3 %v2317_v54  ;;  %2442 = vmatmul.bf16.vlgmr.msrb.gmra.mxu0 %v2317_v54  ;;  %v3913_v54 = vld [vmem:[%s4932_s19 + $0x20] sm:$0xff] }
 0x7b8   : > { %2761 = vmatpush.bf16.msrb.mxu2 %v3913_v54 }
 0x7bc   : > { %2762 = vmatpush.bf16.msrb.mxu2 %v3912_v8 }
 0x834   : > { %v2443_v56 = vpop.f32.mrf.mxu0 }
 0x835   : > { %v5355_v57 = vadd.f32 %v2443_v56, %v2337_v5 }
 0x837   : > { %v5358_v58 = vmul.f32 0.70710677, %v5355_v57 }
 0x839   : > { %v2496_v59 = vmul.f32 %v5358_v58, %v5358_v58 }
 0x83a   : > { %v2429_v15 = vpop.f32.mrf.mxu3 }
 0x83b   : > { %v5362_v61 = vmin.f32 %v2496_v59, 16.0  ;;  %v5364_v63 = vadd.f32 %v2429_v15, %v2336_v26  ;;  %v3919_v15 = vld [vmem:[%s4932_s19 + $0x50] sm:$0xff] }
 0x83c   : > { %v2445_v62 = vpop.f32.mrf.mxu0  ;;  %2777 = vmatpush.bf16.msrb.mxu1 %v3919_v15 }
 0x83d   : > { %v2498_v1 = vmul.f32 2.1237322e-06, %v5362_v61  ;;  %v2509_v6 = vmul.f32 3.8918573e-05, %v5362_v61  ;;  %v5369_v7 = vadd.f32 %v2445_v62, %v2337_v5  ;;  %v5372_v40 = vmul.f32 0.70710677, %v5364_v63 }
 0x83f   : > { %v2510_v45 = vadd.f32 0.001143296, %v2509_v6  ;;  %v2499_v9 = vadd.f32 0.00028619796, %v2498_v1  ;;  %v2456_v10 = vmul.f32 %v5372_v40, %v5372_v40  ;;  %v5378_v11 = vmul.f32 0.70710677, %v5369_v7 }
 0x840   : > { %2778 = vmatpush.bf16.msrb.mxu1 %v3918_v14 }
 0x841   : > { %v2511_v13 = vmul.f32 %v2510_v45, %v5362_v61  ;;  %v5382_v2 = vmin.f32 %v2456_v10, 16.0  ;;  %v2576_v16 = vmul.f32 %v5378_v11, %v5378_v11  ;;  %v2500_v23 = vmul.f32 %v2499_v9, %v5362_v61 }
 0x842   : > { %v2431_v18 = vpop.f32.mrf.mxu3 }
 0x843   : > { %v2512_v19 = vadd.f32 0.014752088, %v2511_v13  ;;  %v5386_v20 = vadd.f32 %v2431_v18, %v2336_v26  ;;  %v2469_v3 = vmul.f32 3.8918573e-05, %v5382_v2  ;;  %v5391_v25 = vmin.f32 %v2576_v16, 16.0 }
 0x844   : > { %v2458_v36 = vmul.f32 2.1237322e-06, %v5382_v2  ;;  %v2501_v17 = vadd.f32 0.0036580483, %v2500_v23 }
 0x845   : > { %v2513_v33 = vmul.f32 %v2512_v19, %v5362_v61  ;;  %v5395_v34 = vmul.f32 0.70710677, %v5386_v20  ;;  %v2470_v37 = vadd.f32 0.001143296, %v2469_v3  ;;  %v2578_v39 = vmul.f32 2.1237322e-06, %v5391_v25 }
 0x846   : > { %v2589_v43 = vmul.f32 3.8918573e-05, %v5391_v25  ;;  %v2459_v49 = vadd.f32 0.00028619796, %v2458_v36  ;;  %v2502_v52 = vmul.f32 %v2501_v17, %v5362_v61 }
 0x847   : > { %v2514_v42 = vadd.f32 0.112945676, %v2513_v33  ;;  %v2536_v44 = vmul.f32 %v5395_v34, %v5395_v34  ;;  %v2471_v35 = vmul.f32 %v2470_v37, %v5382_v2  ;;  %v2579_v38 = vadd.f32 0.00028619796, %v2578_v39  ;;  %v3911_v33 = vld [vmem:[%s4932_s19 + $0x10] sm:$0xff] }
 0x848   : > { %v2590_v46 = vadd.f32 0.001143296, %v2589_v43  ;;  %v2460_v55 = vmul.f32 %v2459_v49, %v5382_v2  ;;  %v2503_v1 = vadd.f32 0.05243302, %v2502_v52  ;;  %2763 = vmatpush.bf16.msrb.mxu2 %v3911_v33  ;;  %v3917_v43 = vld [vmem:[%s4932_s19 + $0x40] sm:$0xff] }
 0x849   : > { %v2515_v30 = vmul.f32 %v2514_v42, %v5362_v61  ;;  %v5406_v47 = vmin.f32 %v2536_v44, 16.0  ;;  %v2472_v27 = vadd.f32 0.014752088, %v2471_v35  ;;  %v2580_v53 = vmul.f32 %v2579_v38, %v5391_v25  ;;  %2779 = vmatpush.bf16.msrb.mxu1 %v3917_v43 }
 0x84a   : > { %v2591_v31 = vmul.f32 %v2590_v46, %v5391_v25  ;;  %v2461_v9 = vadd.f32 0.0036580483, %v2460_v55  ;;  %v2504_v19 = vmul.f32 %v2503_v1, %v5362_v61 }
 0x84b   : > { %v2516_v4 = vadd.f32 0.4994258, %v2515_v30  ;;  %v2473_v32 = vmul.f32 %v2472_v27, %v5382_v2  ;;  %v2538_v50 = vmul.f32 2.1237322e-06, %v5406_v47  ;;  %v2549_v51 = vmul.f32 3.8918573e-05, %v5406_v47 }
 0x84c   : > { %v2592_v12 = vadd.f32 0.014752088, %v2591_v31  ;;  %v2581_v6 = vadd.f32 0.0036580483, %v2580_v53  ;;  %v2462_v60 = vmul.f32 %v2461_v9, %v5382_v2  ;;  %v2505_v35 = vadd.f32 0.18741608, %v2504_v19 }
 0x84d   : > { %v2517_v24 = vmul.f32 %v2516_v4, %v5362_v61  ;;  %v2474_v5 = vadd.f32 0.112945676, %v2473_v32  ;;  %v2550_v56 = vadd.f32 0.001143296, %v2549_v51  ;;  %v2539_v62 = vadd.f32 0.00028619796, %v2538_v50 }
 0x84e   : > { %v2593_v59 = vmul.f32 %v2592_v12, %v5391_v25  ;;  %v2582_v21 = vmul.f32 %v2581_v6, %v5391_v25  ;;  %v3910_v30 = vld [vmem:[%s4932_s19 + $0x8] sm:$0xff]  ;;  %v2463_v46 = vadd.f32 0.05243302, %v2462_v60  ;;  %v2506_v50 = vmul.f32 %v2505_v35, %v5362_v61 }
 0x84f   : > { %v5419_v26 = vadd.f32 1.0, %v2517_v24  ;;  %v2475_v0 = vmul.f32 %v2474_v5, %v5382_v2  ;;  %v2551_v45 = vmul.f32 %v2550_v56, %v5406_v47  ;;  %v2540_v18 = vmul.f32 %v2539_v62, %v5406_v47  ;;  %2764 = vmatpush.bf16.msrb.mxu2 %v3910_v30 }
 0x850   : > { %v2594_v13 = vadd.f32 0.112945676, %v2593_v59  ;;  %v2583_v29 = vadd.f32 0.05243302, %v2582_v21  ;;  %v2464_v53 = vmul.f32 %v2463_v46, %v5382_v2  ;;  %v2507_v15 = vadd.f32 1.1283791, %v2506_v50 }
 0x851   : > { %4128 = vrcp.f32 %v5419_v26  ;;  %v2476_v10 = vadd.f32 0.4994258, %v2475_v0  ;;  %v2552_v3 = vadd.f32 0.014752088, %v2551_v45  ;;  %v2541_v17 = vadd.f32 0.0036580483, %v2540_v18 }
 0x852   : > { %v2595_v23 = vmul.f32 %v2594_v13, %v5391_v25  ;;  %v2584_v51 = vmul.f32 %v2583_v29, %v5391_v25  ;;  %v2530_v12 = vand.u32 2147483648, %v5419_v26  ;;  %vm2524_vm0 = vweird.f32 %v5419_v26 }
 0x853   : > { %v2477_v16 = vmul.f32 %v2476_v10, %v5382_v2  ;;  %v2553_v42 = vmul.f32 %v2552_v3, %v5406_v47  ;;  %v2542_v31 = vmul.f32 %v2541_v17, %v5406_v47  ;;  %2765 = vmatpush.bf16.msrb.mxu2 %v3909_v22  ;;  %v2528_v55 = vand.u32 2147483647, %v5419_v26 }
 0x854   : > { %v2596_v39 = vadd.f32 0.4994258, %v2595_v23  ;;  %v2585_v59 = vadd.f32 0.18741608, %v2584_v51  ;;  %v2465_v62 = vadd.f32 0.18741608, %v2464_v53 }
 0x855   : > { %v5435_v36 = vadd.f32 1.0, %v2477_v16  ;;  %v2554_v49 = vadd.f32 0.112945676, %v2553_v42  ;;  %v2543_v61 = vadd.f32 0.05243302, %v2542_v31  ;;  %v2531_v6 = vor.u32 1.1754944e-38, %v2530_v12 }
 0x856   : > { %v2597_v48 = vmul.f32 %v2596_v39, %v5391_v25  ;;  %vm2529_vm2 = vcmp.eq.f32.partialorder %v2528_v55, 8.507059e+37  ;;  %v2508_v16 = vmul.f32 %v2507_v15, %v5358_v58  ;;  %v2466_v18 = vmul.f32 %v2465_v62, %v5382_v2 }
 0x857   : > { %v4129_v37 = vpop.eup %4128  ;;  %4130 = vrcp.f32 %v5435_v36  ;;  %v2555_v32 = vmul.f32 %v2554_v49, %v5406_v47  ;;  %v2544_v9 = vmul.f32 %v2543_v61, %v5406_v47  ;;  %vm2484_vm3 = vweird.f32 %v5435_v36 }
 0x858   : > { %v2520_v44 = vmul.f32 %v4129_v37, %v5419_v26  ;;  %v5443_v4 = vadd.f32 1.0, %v2597_v48  ;;  %vm2525_vm15 = vweird.f32 %v4129_v37  ;;  %v2586_v26 = vmul.f32 %v2585_v59, %v5391_v25 }
 0x859   : > { %v2556_v5 = vadd.f32 0.4994258, %v2555_v32  ;;  %vm2526_vm1 = vmor %vm2524_vm0, %vm2525_vm15  ;;  %v2488_v21 = vand.u32 2147483647, %v5435_v36  ;;  %v2490_v33 = vand.u32 2147483648, %v5435_v36 }
 0x85a   : > { %v2521_v38 = vsub.f32 1.0, %v2520_v44  ;;  %4132 = vrcp.f32 %v5443_v4  ;;  %v2610_v60 = vand.u32 2147483648, %v5443_v4  ;;  %v2545_v25 = vadd.f32 0.18741608, %v2544_v9 }
 0x85b   : > { %v2557_v1 = vmul.f32 %v2556_v5, %v5406_v47  ;;  %v2608_v58 = vand.u32 2147483647, %v5443_v4  ;;  %v2467_v2 = vadd.f32 1.1283791, %v2466_v18  ;;  %vm2489_vm8 = vcmp.eq.f32.partialorder %v2488_v21, 8.507059e+37 }
 0x85c   : > { %v2522_v27 = vmul.f32 %v4129_v37, %v2521_v38  ;;  %vm2604_vm9 = vweird.f32 %v5443_v4  ;;  %v2491_v29 = vor.u32 1.1754944e-38, %v2490_v33  ;;  %v2611_v30 = vor.u32 1.1754944e-38, %v2610_v60 }
 0x85d   : > { %v4131_v52 = vpop.eup %4130  ;;  %v2558_v10 = vadd.f32 1.0, %v2557_v1  ;;  %v2546_v38 = vmul.f32 %v2545_v25, %v5406_v47  ;;  %vm2609_vm10 = vcmp.eq.f32.partialorder %v2608_v58, 8.507059e+37  ;;  %v2468_v31 = vmul.f32 %v2467_v2, %v5372_v40 }
 0x85e   : > { %v2523_v24 = vadd.f32 %v4129_v37, %v2522_v27  ;;  %v2480_v54 = vmul.f32 %v4131_v52, %v5435_v36  ;;  %vm2485_vm4 = vweird.f32 %v4131_v52  ;;  %v2449_v47 = vmul.f32 0.5, %v5355_v57 }
 0x85f   : > { %4134 = vrcp.f32 %v2558_v10  ;;  %vm5469_vm6 = vmor %vm2484_vm3, %vm2485_vm4  ;;  %v2568_v22 = vand.u32 2147483647, %v2558_v10  ;;  %vm2564_vm12 = vweird.f32 %v2558_v10 }
 0x860   : > { %v2481_v56 = vsub.f32 1.0, %v2480_v54  ;;  %v2527_v0 = vsel %vm2526_vm1, %v4129_v37, %v2523_v24  ;;  %v4133_v8 = vpop.eup %4132  ;;  %v2587_v37 = vadd.f32 1.1283791, %v2586_v26 }
 0x861   : > { %v2532_v13 = vsel %vm2529_vm2, %v2531_v6, %v2527_v0  ;;  %v2600_v14 = vmul.f32 %v4133_v8, %v5443_v4  ;;  %vm2605_vm5 = vweird.f32 %v4133_v8  ;;  %v2547_v4 = vadd.f32 1.1283791, %v2546_v38 }
 0x862   : > { %v2482_v45 = vmul.f32 %v4131_v52, %v2481_v56  ;;  %v2533_v3 = vmul.f32 %v2532_v13, %v2508_v16  ;;  %vm2606_vm7 = vmor %vm2604_vm9, %vm2605_vm5  ;;  %v2588_v36 = vmul.f32 %v2587_v37, %v5378_v11  ;;  %v2451_v11 = vmul.f32 0.5, %v5369_v7  ;;  %v4085_v13 = vld [vmem:[%s786_s12] ss:$0 sm:$0xff] }
 0x863   : > { %v2601_v23 = vsub.f32 1.0, %v2600_v14  ;;  %v2548_v40 = vmul.f32 %v2547_v4, %v5395_v34  ;;  %vm2569_vm14 = vcmp.eq.f32.partialorder %v2568_v22, 8.507059e+37  ;;  %v2448_v7 = vmul.f32 0.5, %v5364_v63 }
 0x864   : > { %v2483_v19 = vadd.f32 %v4131_v52, %v2482_v45  ;;  %v3688_v35 = vclamps-f32 %v2533_v3, 1.0  ;;  %v2450_v45 = vmul.f32 0.5, %v5386_v20 }
 0x865   : > { %v2602_v39 = vmul.f32 %v4133_v8, %v2601_v23  ;;  %v4135_v17 = vpop.eup %4134 }
 0x866   : > { %v2487_v43 = vsel %vm5469_vm6, %v4131_v52, %v2483_v19  ;;  %v2560_v48 = vmul.f32 %v4135_v17, %v2558_v10  ;;  %v2617_v51 = vadd.f32 1.0, %v3688_v35  ;;  %v2570_v52 = vand.u32 2147483648, %v2558_v10 }
 0x867   : > { %v2603_v44 = vadd.f32 %v4133_v8, %v2602_v39  ;;  %v2492_v49 = vsel %vm2489_vm8, %v2491_v29, %v2487_v43  ;;  %vm2565_vm11 = vweird.f32 %v4135_v17 }
 0x868   : > { %v2561_v50 = vsub.f32 1.0, %v2560_v48  ;;  %v2493_v24 = vmul.f32 %v2492_v49, %v2468_v31  ;;  %v2621_v61 = vmul.f32 %v2617_v51, %v2449_v47  ;;  %vm2566_vm13 = vmor %vm2564_vm12, %vm2565_vm11  ;;  %v2571_v5 = vor.u32 1.1754944e-38, %v2570_v52 }
 0x869   : > { %v2607_v46 = vsel %vm2606_vm7, %v4133_v8, %v2603_v44 }
 0x86a   : > { %v2612_v27 = vsel %vm2609_vm10, %v2611_v30, %v2607_v46  ;;  %v2562_v12 = vmul.f32 %v4135_v17, %v2561_v50  ;;  %v3687_v56 = vclamps-f32 %v2493_v24, 1.0 }
 0x86b   : > { %v2613_v32 = vmul.f32 %v2612_v27, %v2588_v36 }
 0x86c   : > { %v2563_v55 = vadd.f32 %v4135_v17, %v2562_v12  ;;  %v2616_v6 = vadd.f32 1.0, %v3687_v56 }
 0x86d   : > { %v3690_v53 = vclamps-f32 %v2613_v32, 1.0 }
 0x86e   : > { %v2567_v15 = vsel %vm2566_vm13, %v4135_v17, %v2563_v55  ;;  %v2620_v9 = vmul.f32 %v2616_v6, %v2448_v7 }
 0x86f   : > { %v2619_v54 = vadd.f32 1.0, %v3690_v53  ;;  %v2572_v0 = vsel %vm2569_vm14, %v2571_v5, %v2567_v15 }
 0x870   : > { %v2573_v1 = vmul.f32 %v2572_v0, %v2548_v40 }
 0x871   : > { %v2623_v59 = vmul.f32 %v2619_v54, %v2451_v11 }
 0x872   : > { %v3689_v57 = vclamps-f32 %v2573_v1, 1.0 }
 0x873   : > { %v2625_v62 = vpack.c.bf16 %v2623_v59, %v2621_v61 }
 0x874   : > { %v2618_v8 = vadd.f32 1.0, %v3689_v57 }
 0x875   : > { %2780 = vmatmul.bf16.vlgmr.msrb.gmra.mxu1 %v2625_v62 }
 0x876   : > { %v2622_v34 = vmul.f32 %v2618_v8, %v2450_v45 }
 0x878   : > { %v2624_v10 = vpack.c.bf16 %v2622_v34, %v2620_v9 }
 0x87a   : > { %2766 = vmatmul.bf16.vlgmr.msrb.gmra.mxu2 %v2624_v10 }
 0x8f2   : > { %v2781_v26 = vpop.f32.mrf.mxu1 }
 0x8fa   : > { %v2783_v20 = vpop.f32.mrf.mxu1 }
 0x8fd   : > { %v2767_v14 = vpop.f32.mrf.mxu2 }
 0x8fe   : > { %v2768_v16 = vadd.f32 %v4085_v13, %v2767_v14 }
 0x900   : > { %v2782_v18 = vadd.f32 %v2781_v26, %v2768_v16 }
 0x902   : > { %v2786_v19 = vadd.f32 %v2782_v18, %v5296_v28 }
 0x904   : > { %2788 = vst [vmem:[#allocation2] sm:$0xff] %v2786_v19 }
 0x905   : > { %v2769_v63 = vpop.f32.mrf.mxu2 }
 0x906   : > { %v2770_v21 = vadd.f32 %v4085_v13, %v2769_v63 }
 0x908   : > { %v2784_v23 = vadd.f32 %v2783_v20, %v2770_v21  ;;  %2793 = sbr.rel (%p3755_p11) target bundleno = 2319 (0x90f), region = 112 }
 0x90a   : > { %v2787_v3 = vadd.f32 %v2784_v23, %v5299_v41 }
 0x90c   : > { %2789 = vst [vmem:[#allocation2 + $0x8] sm:$0xff] %v2787_v3 }
 0x90d   : > { %2794 = vst [vmem:[%s4936_s14] sm:$0xff] %v2786_v19 }
 0x90e   : > { %2795 = vst [vmem:[%s4936_s14 + $0x8] sm:$0xff] %v2787_v3 }
 0x90f PF: > { %s5638_s12 = sld [smem:[#allocation28_spill]]  ;;  %s2809_s18 = sshll.u32 %s4936_s14, 4  ;;  %s2810_s18 = int_to_ptr.vmem [resolvable:$true] %s2809_s18 }
 0x910   : > { %s5639_s28 = sld [smem:[#allocation48_spill]]  ;;  %s2797_s8 = scalar_lea.sflag [#allocation5], %s4869_s1 }
 0x915   : > { %s3925_s17 = sshll.u32 %s5638_s12, 4 }
 0x916   : > { %s5640_s7 = smov %s5639_s28  ;;  %s2808_s21 = scalar_lea.hbm %s5639_s28, %s3925_s17 }
 0x917   : > { %s2811_s5 = sshll.u32 %s2808_s21, 4  ;;  %s4428_s9 = scalar_lea.hbm %s5640_s7, 32  ;;  %s2812_s5 = int_to_ptr.hbm [resolvable:$true] %s2811_s5 }
 0x918   : > { %s4422_s0 = sshra.s32 %s2812_s5, 4  ;;  %s4423_s0 = int_to_ptr.hbm [resolvable:$true] %s4422_s0 }
 0x919   : > { %s4424_s11 = scalar_lea.hbm %s4423_s0, 16  ;;  %p4429_p6 = scmp.lt.s32.totalorder %s4423_s0, %s5640_s7 }
 0x91a   : > { %p4425_p12 = scmp.ne.s32.totalorder %s4423_s0, %s4424_s11  ;;  %p4430_p0 = scmp.lt.s32.totalorder %s4428_s9, %s4424_s11 }
 0x91c   : > { %p4426_p13 = pnand %p4425_p12, %p4811_p1  ;;  %p4431_p7 = por %p4430_p0, %p4429_p6 }
 0x91e   : > { %p4427_p4 = pneg %p4426_p13 }
 0x920   : > { %p4432_p9 = pnand %p4431_p7, %p4427_p4 }
 0x922   : > { %4435 = shalt.err (!%p4432_p9)
}
 0x923   : > { %s4555_s1 = smov 128   ;;  %s4556_s14 = smov 8  }
 0x924   : > { %3947 = dma.vmem_to_hbm [thread:$0]  (%p4811_p1), %s2810_s18, 256, %s2812_s5, %s2797_s8, %s4555_s1, %s4555_s1, %s4556_s14  }
 0x925 PF: > { %p3982_p3 = scmp.ge.s32.totalorder %s4546_s13, 2  ;;  %s2826_s26 = sand.u32 1, %s4518_s24  }
 0x926   : > { %s2827_s15 = scalar_lea.sflag [#allocation5], %s2826_s26 }
 0x927   : > { %p3978_p10 = pnand %p3982_p3, %p4818_p2 }
 0x929   : > { %p3979_p5 = pneg %p3978_p10 }
 0x92b   : > { %4501 = dma.done.wait (%p3979_p5), %s2827_s15, 256  }
 0x92c   : > { %4503 = vsyncadd (%p3979_p5), %s2827_s15, 4294967040  ;;  %s40_s13 = sadd.s32 1, %s4546_s13   ;;  %s5642_s19 = sld [smem:[#allocation25_spill]] }
 0x92d   : > { %p37_p8 = scmp.ge.s32.totalorder %s40_s13, 6   ;;  %s5643_s23 = sld [smem:[#allocation33_spill]] }
 0x92e   : > { %s5644_s3 = sld [smem:[#allocation26_spill]]  ;;  %s5649_s21 = smov %s4510_s22 }
 0x92f   : > { %s5645_s26 = sld [smem:[#allocation34_spill]]  ;;  %s5651_s24 = smov %s4522_s25 }
 0x930   : > { %s5646_s28 = sld [smem:[#allocation29_spill]]  ;;  %s5653_s27 = smov %s4538_s29 }
 0x931   : > { %s5647_s20 = sld [smem:[#allocation31_spill]] }
 0x932   : > { %s5648_s30 = sld [smem:[#allocation32_spill]]  ;;  %s5650_s22 = smov %s5642_s19 }
 0x933   :  { %39 = sbr.rel (!%p37_p8) target bundleno = 31 (0x1f), region = 226 }
 0x934   : > { %s5652_s25 = smov %s5644_s3 }
 0x937   : > { %s5654_s29 = smov %s5647_s20 }
 0x938   :  { %2833 = vsyncpa [#allocation4], 1 }
 0x939   :  { %2835 = vsyncpa [#allocation4 + $0x1], 1 }
 0x93a   :  { %2836 = vsyncpa [#allocation7], 1 }
 0x93b   :  { %2838 = vsyncpa [#allocation7 + $0x1], 1 }
 0x93c   :  { %2839 = vsyncpa [#allocation10], 1 }
 0x93d   :  { %2841 = vsyncpa [#allocation10 + $0x1], 1 }
 0x93e   :  { %2842 = vsyncpa [#allocation13], 1 }
 0x93f   :  { %2844 = vsyncpa [#allocation13 + $0x1], 1 }
 0x940   :  { %2845 = vsyncpa [#allocation16], 1 }
 0x941   :  { %2847 = vsyncpa [#allocation16 + $0x1], 1 }
 0x942   :  { %2848 = vsyncpa [#allocation5], 1 }
 0x943   :  { %2850 = vsyncpa [#allocation5 + $0x1], 1 }

</bundles_post_ra>
